<compile_context>
chip_gen: v5e
topology: v5e:2x2
jax: 0.10.0
libtpu: 0.0.40
codegen_flags: <defaults>
</compile_context>

<pallas_src>
import functools
import numpy as np
import jax
import jax.numpy as jnp
from jax.experimental import pallas as pl
from jax.experimental.pallas import tpu as pltpu


def _net_kernel(p_ref, w_ref, b_ref, mp_ref, o_ref, *, k_neighbors, sigmoid):
    patches_t = p_ref[0]                                                   # (Kd, M)
    w_t = w_ref[...]                                                       # (N, Kd)
    conv_t = jnp.dot(w_t, patches_t, preferred_element_type=jnp.float32)   # (N, M) == conv2d, transposed
    bias = b_ref[...]                                                      # (N, 1)

    def indicator(x):
        # (k+1)-th smallest value per pixel (== torch.kthvalue(dim=1, k=k+1)),
        # tie-exact iterative masked-min: k+1 passes of (min, count-equal, mask).
        kf = jnp.float32(k_neighbors)
        cur = x                                                            # (N, M)
        cnt_below = jnp.zeros((1, x.shape[1]), jnp.float32)
        kth = jnp.full((1, x.shape[1]), jnp.inf, jnp.float32)
        for _ in range(k_neighbors + 1):
            m = jnp.min(cur, axis=0, keepdims=True)                        # (1, M)
            eq = cur == m
            c = jnp.sum(eq.astype(jnp.float32), axis=0, keepdims=True)     # (1, M)
            hit = jnp.logical_and(cnt_below <= kf, kf < cnt_below + c)
            kth = jnp.where(hit, m, kth)
            cnt_below = cnt_below + c
            cur = jnp.where(eq, jnp.inf, cur)
        if sigmoid > 0:
            return jax.nn.sigmoid((kth - x) / sigmoid)                     # lowestk_sigmoid
        return (x < kth).astype(jnp.float32)                               # lowestk_heaviside

    ind1 = indicator(bias - conv_t)                                        # (N, M)
    ind2 = indicator(conv_t + bias)                                        # (N, M)
    ind = jnp.concatenate([ind1, ind2], axis=0)                            # (2N, M)

    mp_t = mp_ref[...]                                                     # (M, Po)
    o_ref[0] = jnp.dot(ind, mp_t, preferred_element_type=jnp.float32)      # (2N, Po)


def _pool_matrix_1d(in_size, k, s):
    # avg_pool (padding=0, ceil_mode=True): PyTorch divisor == clipped window size.
    out = int(np.ceil((in_size - k) / s)) + 1
    if (out - 1) * s >= in_size:
        out -= 1
    m = np.zeros((out, in_size), dtype=np.float32)
    for o in range(out):
        lo = o * s
        hi = min(lo + k, in_size)
        m[o, lo:hi] = 1.0 / (hi - lo)
    return m


def _adaptive_matrix_1d(in_size, out_size):
    m = np.zeros((out_size, in_size), dtype=np.float32)
    for o in range(out_size):
        lo = (o * in_size) // out_size
        hi = -((-(o + 1) * in_size) // out_size)     # ceil((o+1)*in/out)
        m[o, lo:hi] = 1.0 / (hi - lo)
    return m


def net_forward(x, kernel_convolution, bias_convolution,
                pool_size, pool_stride, finalsize_avg_pooling,
                k_neighbors=1, sigmoid=0.0):
    B, Cin, H, W = x.shape
    N, Cin2, P, P2 = kernel_convolution.shape
    assert Cin == Cin2 and P == P2
    Ho, Wo = H - P + 1, W - P + 1
    M = Ho * Wo
    Kd = Cin * P * P

    # --- glue: im2col, transposed so pixels sit on the lane axis: (B, Kd, M) ---
    # Kd ordering is (cin, i, j) to match torch weight.reshape(N, -1); M is (ho, wo) row-major.
    cols = jnp.stack([x[:, :, i:i + Ho, j:j + Wo]
                      for i in range(P) for j in range(P)], axis=2)        # (B, Cin, P*P, Ho, Wo)
    cols = cols.reshape(B, Kd, M)

    w_t = kernel_convolution.reshape(N, Kd)                                # (N, Kd)
    b_col = bias_convolution.reshape(N, 1)                                 # (N, 1)

    # --- glue: pooling (and optional adaptive pooling) as one transposed matrix (M, Po) ---
    ph = _pool_matrix_1d(Ho, pool_size, pool_stride)
    pw = _pool_matrix_1d(Wo, pool_size, pool_stride)
    Oh, Ow = ph.shape[0], pw.shape[0]
    if finalsize_avg_pooling > 0:
        ph = _adaptive_matrix_1d(Oh, finalsize_avg_pooling) @ ph
        pw = _adaptive_matrix_1d(Ow, finalsize_avg_pooling) @ pw
        Oh = Ow = finalsize_avg_pooling
    m_pool_t = jnp.asarray(np.kron(ph, pw).T)                              # (M, Po)
    Po = Oh * Ow

    kernel = functools.partial(_net_kernel, k_neighbors=k_neighbors, sigmoid=sigmoid)
    out = pl.pallas_call(
        kernel,
        out_shape=jax.ShapeDtypeStruct((B, 2 * N, Po), jnp.float32),
        grid_spec=pltpu.PrefetchScalarGridSpec(
            num_scalar_prefetch=0,
            grid=(B,),
            in_specs=[pl.BlockSpec((1, Kd, M), lambda b: (b, 0, 0)),
                      pl.BlockSpec((N, Kd), lambda b: (0, 0)),
                      pl.BlockSpec((N, 1), lambda b: (0, 0)),
                      pl.BlockSpec((M, Po), lambda b: (0, 0))],
            out_specs=pl.BlockSpec((1, 2 * N, Po), lambda b: (b, 0, 0)),
        ),
        compiler_params=pltpu.CompilerParams(dimension_semantics=("parallel",)),
    )(cols, w_t, b_col, m_pool_t)

    # split the fused output and reshape straight to NCHW (already channel-major)
    out1 = out[:, :N, :].reshape(B, N, Oh, Ow)
    out2 = out[:, N:, :].reshape(B, N, Oh, Ow)
    return out1, out2


if __name__ == "__main__":
    # small shapes consistent with the module
    B, Cin, S = 2, 4, 16          # batch, input_channels, spatial_size
    P = 3                         # patch (conv kernel) size
    N_CH = 32                     # n_channel_convolution
    K_NEIGHBORS = 4               # k_neighbors
    SIGMOID = 0.0                 # heaviside path
    POOL, STRIDE, FINAL = 2, 2, 0 # spatialsize/stride_avg_pooling, finalsize_avg_pooling

    key = jax.random.PRNGKey(0)
    k1, k2, k3 = jax.random.split(key, 3)

    # deterministic synthetic parameters mirroring the script's preprocessing:
    #   kernel = (patches @ Wh) @ Wh.T,  bias = 0.5 * ||patches @ Wh||^2
    D = Cin * P * P
    patches_np = np.asarray(jax.random.normal(k1, (N_CH, Cin, P, P), jnp.float32))
    whitening = np.asarray(jax.random.normal(k2, (D, D), jnp.float32)) / np.sqrt(D)
    pf = patches_np.reshape(N_CH, D)
    w_white = pf @ whitening
    kernel_convolution = jnp.asarray((w_white @ whitening.T).reshape(N_CH, Cin, P, P).astype(np.float32))
    bias_convolution = jnp.asarray((0.5 * (np.linalg.norm(w_white, axis=1) ** 2))
                                   .astype(np.float32).reshape(1, N_CH, 1, 1))

    x = jax.random.normal(k3, (B, Cin, S, S), jnp.float32)

    out1, out2 = net_forward(x, kernel_convolution, bias_convolution,
                             POOL, STRIDE, FINAL, K_NEIGHBORS, SIGMOID)
    jax.block_until_ready((out1, out2))

    # --- reference check in plain JAX (same math) ---
    Ho = Wo = S - P + 1
    cols = jnp.stack([x[:, :, i:i + Ho, j:j + Wo]
                      for i in range(P) for j in range(P)], axis=2)
    cols = cols.reshape(B, D, Ho, Wo).transpose(0, 2, 3, 1).reshape(B, Ho * Wo, D)
    conv = jnp.einsum('bmk,nk->bmn', cols, kernel_convolution.reshape(N_CH, D),
                      precision=jax.lax.Precision.HIGHEST)
    bias = bias_convolution.reshape(1, 1, N_CH)

    def ref_lowestk(v):
        kth = jnp.sort(v, axis=-1)[..., K_NEIGHBORS:K_NEIGHBORS + 1]
        return (v < kth).astype(jnp.float32)

    def ref_pool(ind):  # (B, M, N) -> (B, N, Oh, Ow), exact since 14 % 2 == 0
        a = ind.reshape(B, Ho // POOL, POOL, Wo // POOL, POOL, N_CH).mean(axis=(2, 4))
        return a.transpose(0, 3, 1, 2)

    ref1 = ref_pool(ref_lowestk(-conv + bias))
    ref2 = ref_pool(ref_lowestk(conv + bias))

    mism1 = float(jnp.mean((jnp.abs(out1 - ref1) > 1e-3).astype(jnp.float32)))
    mism2 = float(jnp.mean((jnp.abs(out2 - ref2) > 1e-3).astype(jnp.float32)))
    assert out1.shape == (B, N_CH, Ho // POOL, Wo // POOL) and out2.shape == out1.shape
    # allow a tiny mismatch budget for MXU f32 rounding flipping a rank near a tie
    assert mism1 < 0.01 and mism2 < 0.01, (mism1, mism2)

    print("KERNEL_OK")
</pallas_src>

<mosaic_0001>
module attributes {stable_mosaic.version = 11 : i64} {
  func.func @_net_kernel(%arg0: i32, %arg1: memref<1x36x196xf32, #tpu.memory_space<vmem>>, %arg2: memref<32x36xf32, #tpu.memory_space<vmem>>, %arg3: memref<32x1xf32, #tpu.memory_space<vmem>>, %arg4: memref<196x49xf32, #tpu.memory_space<vmem>>, %arg5: memref<1x64x49xf32, #tpu.memory_space<vmem>>) attributes {dimension_semantics = [#tpu.dimension_semantics<parallel>], iteration_bounds = array<i64: 2>, scalar_prefetch = 0 : i64, scratch_operands = 0 : i64, tpu.core_type = #tpu.core_type<tc>, window_params = [{transform_indices = @transform_0, window_bounds = array<i64: 1, 36, 196>}, {pipeline_mode = #tpu.pipeline_mode<synchronous>, transform_indices = @transform_1, window_bounds = array<i64: 32, 36>}, {pipeline_mode = #tpu.pipeline_mode<synchronous>, transform_indices = @transform_2, window_bounds = array<i64: 32, 1>}, {pipeline_mode = #tpu.pipeline_mode<synchronous>, transform_indices = @transform_3, window_bounds = array<i64: 196, 49>}, {transform_indices = @transform_4, window_bounds = array<i64: 1, 64, 49>}]} {
    %c0 = arith.constant 0 : index
    %c0_0 = arith.constant 0 : index
    %c0_1 = arith.constant 0 : index
    %0 = vector.load %arg1[%c0, %c0_0, %c0_1] : memref<1x36x196xf32, #tpu.memory_space<vmem>>, vector<1x36x196xf32>
    %1 = vector.shape_cast %0 : vector<1x36x196xf32> to vector<36x196xf32>
    %c0_2 = arith.constant 0 : index
    %c0_3 = arith.constant 0 : index
    %2 = vector.load %arg2[%c0_2, %c0_3] : memref<32x36xf32, #tpu.memory_space<vmem>>, vector<32x36xf32>
    %cst = arith.constant dense<0.000000e+00> : vector<32x196xf32>
    %3 = tpu.matmul %2, %1, %cst {dimension_numbers = #tpu.dot_dimension_numbers<[1], [0], [0], [1], [0, 0, 1, 1], [], []>} : vector<32x36xf32>, vector<36x196xf32>, vector<32x196xf32> -> vector<32x196xf32>
    %c0_4 = arith.constant 0 : index
    %c0_5 = arith.constant 0 : index
    %4 = vector.load %arg3[%c0_4, %c0_5] : memref<32x1xf32, #tpu.memory_space<vmem>>, vector<32x1xf32>
    %5 = vector.broadcast %4 : vector<32x1xf32> to vector<32x196xf32>
    %6 = arith.subf %5, %3 : vector<32x196xf32>
    %cst_6 = arith.constant 0.000000e+00 : f32
    %7 = vector.broadcast %cst_6 : f32 to vector<1x196xf32>
    %cst_7 = arith.constant 0x7F800000 : f32
    %8 = vector.broadcast %cst_7 : f32 to vector<1x196xf32>
    %cst_8 = arith.constant dense<0x7F800000> : vector<196xf32>
    %9 = vector.multi_reduction <minimumf>, %6, %cst_8 [0] : vector<32x196xf32> to vector<196xf32>
    %10 = vector.shape_cast %9 : vector<196xf32> to vector<1x196xf32>
    %11 = vector.broadcast %10 : vector<1x196xf32> to vector<32x196xf32>
    %12 = arith.cmpf oeq, %6, %11 : vector<32x196xf32>
    %13 = arith.extui %12 : vector<32x196xi1> to vector<32x196xi32>
    %14 = arith.sitofp %13 : vector<32x196xi32> to vector<32x196xf32>
    %cst_9 = arith.constant dense<0.000000e+00> : vector<196xf32>
    %15 = vector.multi_reduction <add>, %14, %cst_9 [0] : vector<32x196xf32> to vector<196xf32>
    %16 = vector.shape_cast %15 : vector<196xf32> to vector<1x196xf32>
    %cst_10 = arith.constant 4.000000e+00 : f32
    %17 = vector.broadcast %cst_10 : f32 to vector<1x196xf32>
    %18 = arith.cmpf ole, %7, %17 : vector<1x196xf32>
    %19 = arith.addf %7, %16 : vector<1x196xf32>
    %cst_11 = arith.constant 4.000000e+00 : f32
    %20 = vector.broadcast %cst_11 : f32 to vector<1x196xf32>
    %21 = arith.cmpf olt, %20, %19 : vector<1x196xf32>
    %22 = arith.andi %18, %21 : vector<1x196xi1>
    %23 = arith.select %22, %10, %8 : vector<1x196xi1>, vector<1x196xf32>
    %24 = arith.addf %7, %16 : vector<1x196xf32>
    %cst_12 = arith.constant 0x7F800000 : f32
    %25 = vector.broadcast %cst_12 : f32 to vector<32x196xf32>
    %26 = arith.select %12, %25, %6 : vector<32x196xi1>, vector<32x196xf32>
    %cst_13 = arith.constant dense<0x7F800000> : vector<196xf32>
    %27 = vector.multi_reduction <minimumf>, %26, %cst_13 [0] : vector<32x196xf32> to vector<196xf32>
    %28 = vector.shape_cast %27 : vector<196xf32> to vector<1x196xf32>
    %29 = vector.broadcast %28 : vector<1x196xf32> to vector<32x196xf32>
    %30 = arith.cmpf oeq, %26, %29 : vector<32x196xf32>
    %31 = arith.extui %30 : vector<32x196xi1> to vector<32x196xi32>
    %32 = arith.sitofp %31 : vector<32x196xi32> to vector<32x196xf32>
    %cst_14 = arith.constant dense<0.000000e+00> : vector<196xf32>
    %33 = vector.multi_reduction <add>, %32, %cst_14 [0] : vector<32x196xf32> to vector<196xf32>
    %34 = vector.shape_cast %33 : vector<196xf32> to vector<1x196xf32>
    %cst_15 = arith.constant 4.000000e+00 : f32
    %35 = vector.broadcast %cst_15 : f32 to vector<1x196xf32>
    %36 = arith.cmpf ole, %24, %35 : vector<1x196xf32>
    %37 = arith.addf %24, %34 : vector<1x196xf32>
    %cst_16 = arith.constant 4.000000e+00 : f32
    %38 = vector.broadcast %cst_16 : f32 to vector<1x196xf32>
    %39 = arith.cmpf olt, %38, %37 : vector<1x196xf32>
    %40 = arith.andi %36, %39 : vector<1x196xi1>
    %41 = arith.select %40, %28, %23 : vector<1x196xi1>, vector<1x196xf32>
    %42 = arith.addf %24, %34 : vector<1x196xf32>
    %cst_17 = arith.constant 0x7F800000 : f32
    %43 = vector.broadcast %cst_17 : f32 to vector<32x196xf32>
    %44 = arith.select %30, %43, %26 : vector<32x196xi1>, vector<32x196xf32>
    %cst_18 = arith.constant dense<0x7F800000> : vector<196xf32>
    %45 = vector.multi_reduction <minimumf>, %44, %cst_18 [0] : vector<32x196xf32> to vector<196xf32>
    %46 = vector.shape_cast %45 : vector<196xf32> to vector<1x196xf32>
    %47 = vector.broadcast %46 : vector<1x196xf32> to vector<32x196xf32>
    %48 = arith.cmpf oeq, %44, %47 : vector<32x196xf32>
    %49 = arith.extui %48 : vector<32x196xi1> to vector<32x196xi32>
    %50 = arith.sitofp %49 : vector<32x196xi32> to vector<32x196xf32>
    %cst_19 = arith.constant dense<0.000000e+00> : vector<196xf32>
    %51 = vector.multi_reduction <add>, %50, %cst_19 [0] : vector<32x196xf32> to vector<196xf32>
    %52 = vector.shape_cast %51 : vector<196xf32> to vector<1x196xf32>
    %cst_20 = arith.constant 4.000000e+00 : f32
    %53 = vector.broadcast %cst_20 : f32 to vector<1x196xf32>
    %54 = arith.cmpf ole, %42, %53 : vector<1x196xf32>
    %55 = arith.addf %42, %52 : vector<1x196xf32>
    %cst_21 = arith.constant 4.000000e+00 : f32
    %56 = vector.broadcast %cst_21 : f32 to vector<1x196xf32>
    %57 = arith.cmpf olt, %56, %55 : vector<1x196xf32>
    %58 = arith.andi %54, %57 : vector<1x196xi1>
    %59 = arith.select %58, %46, %41 : vector<1x196xi1>, vector<1x196xf32>
    %60 = arith.addf %42, %52 : vector<1x196xf32>
    %cst_22 = arith.constant 0x7F800000 : f32
    %61 = vector.broadcast %cst_22 : f32 to vector<32x196xf32>
    %62 = arith.select %48, %61, %44 : vector<32x196xi1>, vector<32x196xf32>
    %cst_23 = arith.constant dense<0x7F800000> : vector<196xf32>
    %63 = vector.multi_reduction <minimumf>, %62, %cst_23 [0] : vector<32x196xf32> to vector<196xf32>
    %64 = vector.shape_cast %63 : vector<196xf32> to vector<1x196xf32>
    %65 = vector.broadcast %64 : vector<1x196xf32> to vector<32x196xf32>
    %66 = arith.cmpf oeq, %62, %65 : vector<32x196xf32>
    %67 = arith.extui %66 : vector<32x196xi1> to vector<32x196xi32>
    %68 = arith.sitofp %67 : vector<32x196xi32> to vector<32x196xf32>
    %cst_24 = arith.constant dense<0.000000e+00> : vector<196xf32>
    %69 = vector.multi_reduction <add>, %68, %cst_24 [0] : vector<32x196xf32> to vector<196xf32>
    %70 = vector.shape_cast %69 : vector<196xf32> to vector<1x196xf32>
    %cst_25 = arith.constant 4.000000e+00 : f32
    %71 = vector.broadcast %cst_25 : f32 to vector<1x196xf32>
    %72 = arith.cmpf ole, %60, %71 : vector<1x196xf32>
    %73 = arith.addf %60, %70 : vector<1x196xf32>
    %cst_26 = arith.constant 4.000000e+00 : f32
    %74 = vector.broadcast %cst_26 : f32 to vector<1x196xf32>
    %75 = arith.cmpf olt, %74, %73 : vector<1x196xf32>
    %76 = arith.andi %72, %75 : vector<1x196xi1>
    %77 = arith.select %76, %64, %59 : vector<1x196xi1>, vector<1x196xf32>
    %78 = arith.addf %60, %70 : vector<1x196xf32>
    %cst_27 = arith.constant 0x7F800000 : f32
    %79 = vector.broadcast %cst_27 : f32 to vector<32x196xf32>
    %80 = arith.select %66, %79, %62 : vector<32x196xi1>, vector<32x196xf32>
    %cst_28 = arith.constant dense<0x7F800000> : vector<196xf32>
    %81 = vector.multi_reduction <minimumf>, %80, %cst_28 [0] : vector<32x196xf32> to vector<196xf32>
    %82 = vector.shape_cast %81 : vector<196xf32> to vector<1x196xf32>
    %83 = vector.broadcast %82 : vector<1x196xf32> to vector<32x196xf32>
    %84 = arith.cmpf oeq, %80, %83 : vector<32x196xf32>
    %85 = arith.extui %84 : vector<32x196xi1> to vector<32x196xi32>
    %86 = arith.sitofp %85 : vector<32x196xi32> to vector<32x196xf32>
    %cst_29 = arith.constant dense<0.000000e+00> : vector<196xf32>
    %87 = vector.multi_reduction <add>, %86, %cst_29 [0] : vector<32x196xf32> to vector<196xf32>
    %88 = vector.shape_cast %87 : vector<196xf32> to vector<1x196xf32>
    %cst_30 = arith.constant 4.000000e+00 : f32
    %89 = vector.broadcast %cst_30 : f32 to vector<1x196xf32>
    %90 = arith.cmpf ole, %78, %89 : vector<1x196xf32>
    %91 = arith.addf %78, %88 : vector<1x196xf32>
    %cst_31 = arith.constant 4.000000e+00 : f32
    %92 = vector.broadcast %cst_31 : f32 to vector<1x196xf32>
    %93 = arith.cmpf olt, %92, %91 : vector<1x196xf32>
    %94 = arith.andi %90, %93 : vector<1x196xi1>
    %95 = arith.select %94, %82, %77 : vector<1x196xi1>, vector<1x196xf32>
    %96 = vector.broadcast %95 : vector<1x196xf32> to vector<32x196xf32>
    %97 = arith.cmpf olt, %6, %96 : vector<32x196xf32>
    %98 = arith.extui %97 : vector<32x196xi1> to vector<32x196xi32>
    %99 = arith.sitofp %98 : vector<32x196xi32> to vector<32x196xf32>
    %100 = vector.broadcast %4 : vector<32x1xf32> to vector<32x196xf32>
    %101 = arith.addf %3, %100 : vector<32x196xf32>
    %cst_32 = arith.constant 0.000000e+00 : f32
    %102 = vector.broadcast %cst_32 : f32 to vector<1x196xf32>
    %cst_33 = arith.constant 0x7F800000 : f32
    %103 = vector.broadcast %cst_33 : f32 to vector<1x196xf32>
    %cst_34 = arith.constant dense<0x7F800000> : vector<196xf32>
    %104 = vector.multi_reduction <minimumf>, %101, %cst_34 [0] : vector<32x196xf32> to vector<196xf32>
    %105 = vector.shape_cast %104 : vector<196xf32> to vector<1x196xf32>
    %106 = vector.broadcast %105 : vector<1x196xf32> to vector<32x196xf32>
    %107 = arith.cmpf oeq, %101, %106 : vector<32x196xf32>
    %108 = arith.extui %107 : vector<32x196xi1> to vector<32x196xi32>
    %109 = arith.sitofp %108 : vector<32x196xi32> to vector<32x196xf32>
    %cst_35 = arith.constant dense<0.000000e+00> : vector<196xf32>
    %110 = vector.multi_reduction <add>, %109, %cst_35 [0] : vector<32x196xf32> to vector<196xf32>
    %111 = vector.shape_cast %110 : vector<196xf32> to vector<1x196xf32>
    %cst_36 = arith.constant 4.000000e+00 : f32
    %112 = vector.broadcast %cst_36 : f32 to vector<1x196xf32>
    %113 = arith.cmpf ole, %102, %112 : vector<1x196xf32>
    %114 = arith.addf %102, %111 : vector<1x196xf32>
    %cst_37 = arith.constant 4.000000e+00 : f32
    %115 = vector.broadcast %cst_37 : f32 to vector<1x196xf32>
    %116 = arith.cmpf olt, %115, %114 : vector<1x196xf32>
    %117 = arith.andi %113, %116 : vector<1x196xi1>
    %118 = arith.select %117, %105, %103 : vector<1x196xi1>, vector<1x196xf32>
    %119 = arith.addf %102, %111 : vector<1x196xf32>
    %cst_38 = arith.constant 0x7F800000 : f32
    %120 = vector.broadcast %cst_38 : f32 to vector<32x196xf32>
    %121 = arith.select %107, %120, %101 : vector<32x196xi1>, vector<32x196xf32>
    %cst_39 = arith.constant dense<0x7F800000> : vector<196xf32>
    %122 = vector.multi_reduction <minimumf>, %121, %cst_39 [0] : vector<32x196xf32> to vector<196xf32>
    %123 = vector.shape_cast %122 : vector<196xf32> to vector<1x196xf32>
    %124 = vector.broadcast %123 : vector<1x196xf32> to vector<32x196xf32>
    %125 = arith.cmpf oeq, %121, %124 : vector<32x196xf32>
    %126 = arith.extui %125 : vector<32x196xi1> to vector<32x196xi32>
    %127 = arith.sitofp %126 : vector<32x196xi32> to vector<32x196xf32>
    %cst_40 = arith.constant dense<0.000000e+00> : vector<196xf32>
    %128 = vector.multi_reduction <add>, %127, %cst_40 [0] : vector<32x196xf32> to vector<196xf32>
    %129 = vector.shape_cast %128 : vector<196xf32> to vector<1x196xf32>
    %cst_41 = arith.constant 4.000000e+00 : f32
    %130 = vector.broadcast %cst_41 : f32 to vector<1x196xf32>
    %131 = arith.cmpf ole, %119, %130 : vector<1x196xf32>
    %132 = arith.addf %119, %129 : vector<1x196xf32>
    %cst_42 = arith.constant 4.000000e+00 : f32
    %133 = vector.broadcast %cst_42 : f32 to vector<1x196xf32>
    %134 = arith.cmpf olt, %133, %132 : vector<1x196xf32>
    %135 = arith.andi %131, %134 : vector<1x196xi1>
    %136 = arith.select %135, %123, %118 : vector<1x196xi1>, vector<1x196xf32>
    %137 = arith.addf %119, %129 : vector<1x196xf32>
    %cst_43 = arith.constant 0x7F800000 : f32
    %138 = vector.broadcast %cst_43 : f32 to vector<32x196xf32>
    %139 = arith.select %125, %138, %121 : vector<32x196xi1>, vector<32x196xf32>
    %cst_44 = arith.constant dense<0x7F800000> : vector<196xf32>
    %140 = vector.multi_reduction <minimumf>, %139, %cst_44 [0] : vector<32x196xf32> to vector<196xf32>
    %141 = vector.shape_cast %140 : vector<196xf32> to vector<1x196xf32>
    %142 = vector.broadcast %141 : vector<1x196xf32> to vector<32x196xf32>
    %143 = arith.cmpf oeq, %139, %142 : vector<32x196xf32>
    %144 = arith.extui %143 : vector<32x196xi1> to vector<32x196xi32>
    %145 = arith.sitofp %144 : vector<32x196xi32> to vector<32x196xf32>
    %cst_45 = arith.constant dense<0.000000e+00> : vector<196xf32>
    %146 = vector.multi_reduction <add>, %145, %cst_45 [0] : vector<32x196xf32> to vector<196xf32>
    %147 = vector.shape_cast %146 : vector<196xf32> to vector<1x196xf32>
    %cst_46 = arith.constant 4.000000e+00 : f32
    %148 = vector.broadcast %cst_46 : f32 to vector<1x196xf32>
    %149 = arith.cmpf ole, %137, %148 : vector<1x196xf32>
    %150 = arith.addf %137, %147 : vector<1x196xf32>
    %cst_47 = arith.constant 4.000000e+00 : f32
    %151 = vector.broadcast %cst_47 : f32 to vector<1x196xf32>
    %152 = arith.cmpf olt, %151, %150 : vector<1x196xf32>
    %153 = arith.andi %149, %152 : vector<1x196xi1>
    %154 = arith.select %153, %141, %136 : vector<1x196xi1>, vector<1x196xf32>
    %155 = arith.addf %137, %147 : vector<1x196xf32>
    %cst_48 = arith.constant 0x7F800000 : f32
    %156 = vector.broadcast %cst_48 : f32 to vector<32x196xf32>
    %157 = arith.select %143, %156, %139 : vector<32x196xi1>, vector<32x196xf32>
    %cst_49 = arith.constant dense<0x7F800000> : vector<196xf32>
    %158 = vector.multi_reduction <minimumf>, %157, %cst_49 [0] : vector<32x196xf32> to vector<196xf32>
    %159 = vector.shape_cast %158 : vector<196xf32> to vector<1x196xf32>
    %160 = vector.broadcast %159 : vector<1x196xf32> to vector<32x196xf32>
    %161 = arith.cmpf oeq, %157, %160 : vector<32x196xf32>
    %162 = arith.extui %161 : vector<32x196xi1> to vector<32x196xi32>
    %163 = arith.sitofp %162 : vector<32x196xi32> to vector<32x196xf32>
    %cst_50 = arith.constant dense<0.000000e+00> : vector<196xf32>
    %164 = vector.multi_reduction <add>, %163, %cst_50 [0] : vector<32x196xf32> to vector<196xf32>
    %165 = vector.shape_cast %164 : vector<196xf32> to vector<1x196xf32>
    %cst_51 = arith.constant 4.000000e+00 : f32
    %166 = vector.broadcast %cst_51 : f32 to vector<1x196xf32>
    %167 = arith.cmpf ole, %155, %166 : vector<1x196xf32>
    %168 = arith.addf %155, %165 : vector<1x196xf32>
    %cst_52 = arith.constant 4.000000e+00 : f32
    %169 = vector.broadcast %cst_52 : f32 to vector<1x196xf32>
    %170 = arith.cmpf olt, %169, %168 : vector<1x196xf32>
    %171 = arith.andi %167, %170 : vector<1x196xi1>
    %172 = arith.select %171, %159, %154 : vector<1x196xi1>, vector<1x196xf32>
    %173 = arith.addf %155, %165 : vector<1x196xf32>
    %cst_53 = arith.constant 0x7F800000 : f32
    %174 = vector.broadcast %cst_53 : f32 to vector<32x196xf32>
    %175 = arith.select %161, %174, %157 : vector<32x196xi1>, vector<32x196xf32>
    %cst_54 = arith.constant dense<0x7F800000> : vector<196xf32>
    %176 = vector.multi_reduction <minimumf>, %175, %cst_54 [0] : vector<32x196xf32> to vector<196xf32>
    %177 = vector.shape_cast %176 : vector<196xf32> to vector<1x196xf32>
    %178 = vector.broadcast %177 : vector<1x196xf32> to vector<32x196xf32>
    %179 = arith.cmpf oeq, %175, %178 : vector<32x196xf32>
    %180 = arith.extui %179 : vector<32x196xi1> to vector<32x196xi32>
    %181 = arith.sitofp %180 : vector<32x196xi32> to vector<32x196xf32>
    %cst_55 = arith.constant dense<0.000000e+00> : vector<196xf32>
    %182 = vector.multi_reduction <add>, %181, %cst_55 [0] : vector<32x196xf32> to vector<196xf32>
    %183 = vector.shape_cast %182 : vector<196xf32> to vector<1x196xf32>
    %cst_56 = arith.constant 4.000000e+00 : f32
    %184 = vector.broadcast %cst_56 : f32 to vector<1x196xf32>
    %185 = arith.cmpf ole, %173, %184 : vector<1x196xf32>
    %186 = arith.addf %173, %183 : vector<1x196xf32>
    %cst_57 = arith.constant 4.000000e+00 : f32
    %187 = vector.broadcast %cst_57 : f32 to vector<1x196xf32>
    %188 = arith.cmpf olt, %187, %186 : vector<1x196xf32>
    %189 = arith.andi %185, %188 : vector<1x196xi1>
    %190 = arith.select %189, %177, %172 : vector<1x196xi1>, vector<1x196xf32>
    %191 = vector.broadcast %190 : vector<1x196xf32> to vector<32x196xf32>
    %192 = arith.cmpf olt, %101, %191 : vector<32x196xf32>
    %193 = arith.extui %192 : vector<32x196xi1> to vector<32x196xi32>
    %194 = arith.sitofp %193 : vector<32x196xi32> to vector<32x196xf32>
    %195 = tpu.concatenate %99, %194 in 0 : vector<32x196xf32>, vector<32x196xf32> -> vector<64x196xf32>
    %c0_58 = arith.constant 0 : index
    %c0_59 = arith.constant 0 : index
    %196 = vector.load %arg4[%c0_58, %c0_59] : memref<196x49xf32, #tpu.memory_space<vmem>>, vector<196x49xf32>
    %cst_60 = arith.constant dense<0.000000e+00> : vector<64x49xf32>
    %197 = tpu.matmul %195, %196, %cst_60 {dimension_numbers = #tpu.dot_dimension_numbers<[1], [0], [0], [1], [0, 0, 1, 1], [], []>} : vector<64x196xf32>, vector<196x49xf32>, vector<64x49xf32> -> vector<64x49xf32>
    %c0_61 = arith.constant 0 : index
    %c0_62 = arith.constant 0 : index
    %c0_63 = arith.constant 0 : index
    %198 = vector.load %arg5[%c0_61, %c0_62, %c0_63] : memref<1x64x49xf32, #tpu.memory_space<vmem>>, vector<1x64x49xf32>
    %199 = vector.shape_cast %198 : vector<1x64x49xf32> to vector<64x49xf32>
    %200 = vector.shape_cast %197 : vector<64x49xf32> to vector<1x64x49xf32>
    tpu.vector_store %arg5[%c0_61, %c0_62, %c0_63], %200 {strides = array<i32>} : memref<1x64x49xf32, #tpu.memory_space<vmem>>, vector<1x64x49xf32>,
    return
  }
  func.func @transform_0(%arg0: i32) -> (i32, i32, i32) {
    %c0_i32 = arith.constant 0 : i32
    %c0_i32_0 = arith.constant 0 : i32
    %c0_i32_1 = arith.constant 0 : i32
    return %arg0, %c0_i32, %c0_i32_0 : i32, i32, i32
  }
  func.func @transform_1(%arg0: i32) -> (i32, i32) {
    %c0_i32 = arith.constant 0 : i32
    %c0_i32_0 = arith.constant 0 : i32
    %c0_i32_1 = arith.constant 0 : i32
    return %c0_i32, %c0_i32_0 : i32, i32
  }
  func.func @transform_2(%arg0: i32) -> (i32, i32) {
    %c0_i32 = arith.constant 0 : i32
    %c0_i32_0 = arith.constant 0 : i32
    %c0_i32_1 = arith.constant 0 : i32
    return %c0_i32, %c0_i32_0 : i32, i32
  }
  func.func @transform_3(%arg0: i32) -> (i32, i32) {
    %c0_i32 = arith.constant 0 : i32
    %c0_i32_0 = arith.constant 0 : i32
    %c0_i32_1 = arith.constant 0 : i32
    return %c0_i32, %c0_i32_0 : i32, i32
  }
  func.func @transform_4(%arg0: i32) -> (i32, i32, i32) {
    %c0_i32 = arith.constant 0 : i32
    %c0_i32_0 = arith.constant 0 : i32
    %c0_i32_1 = arith.constant 0 : i32
    return %arg0, %c0_i32, %c0_i32_0 : i32, i32, i32
  }
}

</mosaic_0001>

<bundles_post_ra>
// kernel: tpu_custom_call.1
= control target key start
LH: loop header
LB: loop body
LE: loop exit
PB: predicated region body
PF: predicated region fallthrough
CT: control target
= control target key end

     0   :  { %s1647_s15 = smov 0   ;;  %s3214_s0 = inlined_call_operand.vmem [shape: f32[2,36,196], index: 0, kind: input, shape index: {}]   ;;  %s3215_s1 = inlined_call_operand.vmem [shape: f32[32,36], index: 1, kind: input, shape index: {}]   ;;  %s3216_s2 = inlined_call_operand.vmem [shape: f32[32,1], index: 2, kind: input, shape index: {}]   ;;  %s3217_s3 = inlined_call_operand.vmem [shape: f32[196,49], index: 3, kind: input, shape index: {}]   ;;  %s3218_s4 = inlined_call_operand.vmem [shape: f32[2,64,49], index: 4, kind: output, shape index: {}]  }
   0x1 LB: > { %s1418_s16 = sadd.s32 4294967295, %s1617_s15   ;;  %p1422_p0 = scmp.ge.s32.totalorder %s1617_s15, 1  ;;  %s1617_s15 = sphi %s1647_s15, %s14_s15  }
   0x2   : > { %p162_p1 = scmp.lt.s32.totalorder %s1617_s15, 3 }
   0x4   : > { %p163_p2 = pnand %p1422_p0, %p162_p1 }
   0x6   : > { %166 = sbr.rel (%p163_p2) target bundleno = 560 (0x230), region = 36 }
   0xb   : > { %p188_p3 = scmp.lt.s32.totalorder %s1418_s16, 1  ;;  %v1619_v0 = vmov 0   ;;  %v290_v1 = vld [vmem:[%s3216_s2] sm:$0xff]  ;;  %v292_v2 = vld [vmem:[%s3216_s2 + $0x10] sm:$0xff]  ;;  %vm3237_vm0 = vcmask 1043456   ;;  %v291_v7 = vld [vmem:[%s3216_s2 + $0x8] sm:$0xff] }
   0xc   : > { %1609 = vset.pattern.permute.xlu0 %v1619_v0  ;;  %1610 = vset.pattern.permute.xlu1 %v1619_v0  ;;  %v293_v10 = vld [vmem:[%s3216_s2 + $0x18] sm:$0xff]  ;;  %v208_v15 = vld [vmem:[%s3215_s1] sm:$0xff]  ;;  %vm212_vm1 = vcmask 293888   ;;  %v209_v16 = vld [vmem:[%s3215_s1 + $0x8] sm:$0xff]  ;;  %vm331_vm2 = vcmask 556032  }
   0xd   : > { %s3330_s16 = smov (!%p188_p3, %s1418_s16), 1  ;;  %296 = vperm.xlu0 %1609, %v290_v1   ;;  %306 = vperm.xlu1 %1610, %v292_v2   ;;  %v210_v17 = vld [vmem:[%s3215_s1 + $0x10] sm:$0xff]  ;;  %v211_v18 = vld [vmem:[%s3215_s1 + $0x18] sm:$0xff] }
   0xe   : > { %s1597_s21 = smul.u32 80, %s3330_s16  ;;  %s1571_s13 = sshll.u32 %s3330_s16, 6 }
   0xf   : > { %s3193_s18 = scalar_lea.vmem %s3218_s4, %s1571_s13 }
  0x10   : > { %s192_s24 = scalar_lea.vmem %s3214_s0, %s1597_s21 }
  0x11   : > { %v206_v3 = vld [vmem:[%s192_s24 + $0x40] sm:$0xf]  ;;  %v207_v4 = vld [vmem:[%s192_s24 + $0x48] sm:$0xf]  ;;  %v204_v5 = vld [vmem:[%s192_s24 + $0x30] sm:$0xff] }
  0x12   : > { %1426 = vmatpush.msk.msra.mxu0 %vm3237_vm0, %v206_v3  ;;  %1431 = vmatpush.msk.msra.mxu1 %vm3237_vm0, %v207_v4  ;;  %v205_v6 = vld [vmem:[%s192_s24 + $0x38] sm:$0xff]  ;;  %v202_v8 = vld [vmem:[%s192_s24 + $0x20] sm:$0xff]  ;;  %v203_v9 = vld [vmem:[%s192_s24 + $0x28] sm:$0xff] }
  0x13   : > { %v200_v11 = vld [vmem:[%s192_s24 + $0x10] sm:$0xff]  ;;  %v201_v12 = vld [vmem:[%s192_s24 + $0x18] sm:$0xff]  ;;  %v198_v13 = vld [vmem:[%s192_s24] sm:$0xff] }
  0x14   : > { %244 = vmatpush.msra.mxu0 %v204_v5  ;;  %273 = vmatpush.msra.mxu1 %v205_v6  ;;  %v199_v14 = vld [vmem:[%s192_s24 + $0x8] sm:$0xff] }
  0x15   : > { %301 = vperm.xlu0 %1609, %v291_v7   ;;  %311 = vperm.xlu1 %1610, %v293_v10  }
  0x16   : > { %245 = vmatpush.msra.mxu0 %v202_v8  ;;  %274 = vmatpush.msra.mxu1 %v203_v9  ;;  %v3219_v9 = vmov 0.0  }
  0x18   : > { %246 = vmatpush.msra.mxu0 %v200_v11  ;;  %275 = vmatpush.msra.mxu1 %v201_v12 }
  0x1a   : > { %247 = vmatpush.msra.mxu0 %v198_v13  ;;  %276 = vmatpush.msra.mxu1 %v199_v14 }
  0x1b   : > { %1427 = vmatmul.msk.f32.vlgmr.msra.gmra.mxu0 %vm212_vm1, %v208_v15  ;;  %1432 = vmatmul.msk.f32.vlgmr.msra.gmra.mxu1 %vm212_vm1, %v208_v15 }
  0x23   : > { %1428 = vmatmul.msk.f32.gmra.mxu0 %vm212_vm1, %v209_v16  ;;  %1433 = vmatmul.msk.f32.gmra.mxu1 %vm212_vm1, %v209_v16 }
  0x2b   : > { %1429 = vmatmul.msk.f32.gmra.mxu0 %vm212_vm1, %v210_v17  ;;  %1434 = vmatmul.msk.f32.gmra.mxu1 %vm212_vm1, %v210_v17 }
  0x33   : > { %1430 = vmatmul.msk.f32.gmra.mxu0 %vm212_vm1, %v211_v18  ;;  %1435 = vmatmul.msk.f32.gmra.mxu1 %vm212_vm1, %v211_v18 }
  0x7f   : > { %v1691_v23 = vpop.permute.xlu0 %296  ;;  %v1693_v24 = vpop.permute.xlu1 %306 }
  0x87   : > { %v1697_v27 = vpop.permute.xlu0 %301  ;;  %v1720_v34 = vpop.permute.xlu1 %311 }
  0x98   : > { %v249_v19 = vpop.f32.mrf.mxu0  ;;  %v1687_v20 = vpop.f32.mrf.mxu1 }
  0x99   : > { %v1704_v29 = vsub.f32 %v1691_v23, %v249_v19  ;;  %v1708_v30 = vsub.f32 %v1691_v23, %v1687_v20  ;;  %v1718_v33 = vadd.f32 %v1691_v23, %v249_v19 }
  0x9b   : > { %3254 = vst [vmem:[#allocation3_spill] sm:$0xff] %v1704_v29  ;;  %v332_v44 = vsel %vm331_vm2, %v1708_v30, inf }
  0x9c   : > { %3255 = vst [vmem:[#allocation4_spill] sm:$0xff] %v1708_v30 }
  0x9d   : > { %3258 = vst [vmem:[#allocation7_spill] sm:$0xff] %v1718_v33 }
  0xa0   : > { %v252_v21 = vpop.f32.mrf.mxu0  ;;  %v1689_v22 = vpop.f32.mrf.mxu1 }
  0xa1   : > { %v1712_v31 = vsub.f32 %v1697_v27, %v1689_v22  ;;  %v1726_v36 = vsub.f32 %v1697_v27, %v252_v21  ;;  %v1729_v37 = vadd.f32 %v1697_v27, %v252_v21 }
  0xa3   : > { %3256 = vst [vmem:[#allocation5_spill] sm:$0xff] %v1712_v31  ;;  %v333_v45 = vsel %vm331_vm2, %v1712_v31, inf }
  0xa4   : > { %3260 = vst [vmem:[#allocation9_spill] sm:$0xff] %v1726_v36 }
  0xa5   : > { %3261 = vst [vmem:[#allocation10_spill] sm:$0xff] %v1729_v37 }
  0xa8   : > { %v255_v25 = vpop.f32.mrf.mxu0  ;;  %v1695_v26 = vpop.f32.mrf.mxu1 }
  0xa9   : > { %v1701_v28 = vsub.f32 %v1693_v24, %v1695_v26  ;;  %v1715_v32 = vsub.f32 %v1693_v24, %v255_v25  ;;  %v1723_v35 = vadd.f32 %v1693_v24, %v255_v25 }
  0xab   : > { %3253 = vst [vmem:[#allocation2_spill] sm:$0xff] %v1701_v28  ;;  %v334_v40 = vsel %vm331_vm2, %v1701_v28, inf  ;;  %v322_v46 = vmin.f32 %v1704_v29, %v1715_v32  ;;  %v776_v47 = vmin.f32 %v1718_v33, %v1723_v35 }
  0xac   : > { %3257 = vst [vmem:[#allocation6_spill] sm:$0xff] %v1715_v32  ;;  %v335_v51 = vmin.f32 %v332_v44, %v334_v40 }
  0xad   : > { %3259 = vst [vmem:[#allocation8_spill] sm:$0xff] %v1723_v35 }
  0xb0   : > { %v258_v38 = vpop.f32.mrf.mxu0  ;;  %v1731_v39 = vpop.f32.mrf.mxu1 }
  0xb1   : > { %v1736_v41 = vsub.f32 %v1720_v34, %v258_v38  ;;  %v1739_v42 = vadd.f32 %v1720_v34, %v258_v38  ;;  %v1743_v43 = vsub.f32 %v1720_v34, %v1731_v39 }
  0xb3   : > { %3262 = vst [vmem:[#allocation11_spill] sm:$0xff] %v1736_v41  ;;  %v323_v48 = vmin.f32 %v1726_v36, %v1736_v41  ;;  %v777_v49 = vmin.f32 %v1729_v37, %v1739_v42  ;;  %v336_v50 = vsel %vm331_vm2, %v1743_v43, inf }
  0xb4   : > { %3263 = vst [vmem:[#allocation12_spill] sm:$0xff] %v1739_v42  ;;  %v337_v52 = vmin.f32 %v333_v45, %v336_v50 }
  0xb5   : > { %3264 = vst [vmem:[#allocation13_spill] sm:$0xff] %v1743_v43  ;;  %v324_v53 = vmin.f32 %v322_v46, %v323_v48  ;;  %v778_v54 = vmin.f32 %v776_v47, %v777_v49 }
  0xb6   : > { %v338_v55 = vmin.f32 %v335_v51, %v337_v52 }
  0xb7   : > { %v325_v56 = vrot.slane %v324_v53, 4  ;;  %v779_v57 = vrot.slane %v778_v54, 4 }
  0xb8   : > { %v339_v58 = vrot.slane %v338_v55, 4 }
  0xb9   : > { %v326_v59 = vmin.f32 %v324_v53, %v325_v56  ;;  %v780_v60 = vmin.f32 %v778_v54, %v779_v57 }
  0xba   : > { %v340_v61 = vmin.f32 %v338_v55, %v339_v58 }
  0xbb   : > { %v327_v62 = vrot.slane %v326_v59, 2  ;;  %v781_v63 = vrot.slane %v780_v60, 2 }
  0xbc   : > { %v341_v0 = vrot.slane %v340_v61, 2 }
  0xbd   : > { %v328_v1 = vmin.f32 %v326_v59, %v327_v62  ;;  %v782_v2 = vmin.f32 %v780_v60, %v781_v63 }
  0xbe   : > { %v342_v3 = vmin.f32 %v340_v61, %v341_v0 }
  0xbf   : > { %v329_v4 = vrot.slane %v328_v1, 1  ;;  %v783_v5 = vrot.slane %v782_v2, 1 }
  0xc0   : > { %v343_v6 = vrot.slane %v342_v3, 1 }
  0xc1   : > { %v1759_v7 = vmin.f32 %v328_v1, %v329_v4  ;;  %v1761_v8 = vmin.f32 %v782_v2, %v783_v5 }
  0xc2   : > { %v1774_v13 = vmin.f32 %v342_v3, %v343_v6 }
  0xc3   : > { %3265 = vst [vmem:[#allocation14_spill] sm:$0xff] %v1761_v8  ;;  %vm345_vm3 = vcmp.eq.f32.partialorder %v1704_v29, %v1759_v7  ;;  %vm347_vm4 = vcmp.eq.f32.partialorder %v1726_v36, %v1759_v7  ;;  %vm349_vm5 = vcmp.eq.f32.partialorder %v1715_v32, %v1759_v7  ;;  %vm351_vm6 = vcmp.eq.f32.partialorder %v1736_v41, %v1759_v7 }
  0xc4   : > { %v1436_v10 = vsel %vm345_vm3, 1.0, %v3219_v9  ;;  %v1438_v11 = vsel %vm347_vm4, 1.0, %v3219_v9  ;;  %v1440_v12 = vsel %vm349_vm5, 1.0, %v3219_v9  ;;  %3266 = vst [vmem:[#allocation15_spill] sm:$0xff] %v1774_v13  ;;  %v1777_v15 = vsel %vm345_vm3, inf, %v1704_v29 }
  0xc5   : > { %v369_v14 = vadd.f32 %v1438_v11, %v1436_v10  ;;  %v1780_v16 = vsel %vm347_vm4, inf, %v1726_v36  ;;  %v1783_v17 = vsel %vm349_vm5, inf, %v1715_v32  ;;  %v1789_v18 = vsel %vm351_vm6, inf, %v1736_v41 }
  0xc6   : > { %v408_v19 = vmin.f32 %v1777_v15, %v1783_v17  ;;  %vm798_vm7 = vcmp.eq.f32.partialorder %v1718_v33, %v1761_v8  ;;  %vm800_vm8 = vcmp.eq.f32.partialorder %v1729_v37, %v1761_v8  ;;  %v409_v25 = vmin.f32 %v1780_v16, %v1789_v18 }
  0xc7   : > { %v370_v21 = vadd.f32 %v1440_v12, %v369_v14  ;;  %vm802_vm9 = vcmp.eq.f32.partialorder %v1723_v35, %v1761_v8  ;;  %vm804_vm10 = vcmp.eq.f32.partialorder %v1739_v42, %v1761_v8  ;;  %v1442_v38 = vsel %vm351_vm6, 1.0, %v3219_v9 }
  0xc8   : > { %v1494_v40 = vsel %vm798_vm7, 1.0, %v3219_v9  ;;  %v1496_v44 = vsel %vm800_vm8, 1.0, %v3219_v9  ;;  %v1498_v45 = vsel %vm802_vm9, 1.0, %v3219_v9  ;;  %v410_v47 = vmin.f32 %v408_v19, %v409_v25 }
  0xc9   : > { %v1810_v46 = vadd.f32 %v1442_v38, %v370_v21  ;;  %v822_v48 = vadd.f32 %v1496_v44, %v1494_v40  ;;  %v1813_v49 = vsel %vm798_vm7, inf, %v1718_v33  ;;  %v1816_v50 = vsel %vm800_vm8, inf, %v1729_v37 }
  0xca   : > { %v1819_v51 = vsel %vm802_vm9, inf, %v1723_v35  ;;  %v1825_v52 = vsel %vm804_vm10, inf, %v1739_v42  ;;  %vm346_vm11 = vcmp.eq.f32.partialorder %v1708_v30, %v1774_v13  ;;  %v411_v53 = vrot.slane %v410_v47, 4 }
  0xcb   : > { %v823_v54 = vadd.f32 %v1498_v45, %v822_v48  ;;  %v860_v55 = vmin.f32 %v1813_v49, %v1819_v51  ;;  %v1500_v56 = vsel %vm804_vm10, 1.0, %v3219_v9  ;;  %v861_v57 = vmin.f32 %v1816_v50, %v1825_v52 }
  0xcc   : > { %vm348_vm12 = vcmp.eq.f32.partialorder %v1712_v31, %v1774_v13  ;;  %vm350_vm13 = vcmp.eq.f32.partialorder %v1701_v28, %v1774_v13  ;;  %v412_v58 = vmin.f32 %v410_v47, %v411_v53  ;;  %v1437_v60 = vsel %vm346_vm11, 1.0, %v3219_v9 }
  0xcd   : > { %v1841_v59 = vadd.f32 %v1500_v56, %v823_v54  ;;  %v862_v61 = vmin.f32 %v860_v55, %v861_v57  ;;  %vm352_vm14 = vcmp.eq.f32.partialorder %v1743_v43, %v1774_v13  ;;  %v1439_v62 = vsel %vm348_vm12, 1.0, %v3219_v9 }
  0xce   : > { %v413_v63 = vrot.slane %v412_v58, 2  ;;  %v1441_v0 = vsel %vm350_vm13, 1.0, %v3219_v9  ;;  %v378_v1 = vsel %vm331_vm2, %v1437_v60, 0.0  ;;  %v379_v3 = vsel %vm331_vm2, %v1439_v62, 0.0 }
  0xcf   : > { %v863_v2 = vrot.slane %v862_v61, 4  ;;  %v1443_v5 = vsel %vm352_vm14, 1.0, %v3219_v9  ;;  %v380_v6 = vadd.f32 %v379_v3, %v378_v1  ;;  %v381_v11 = vsel %vm331_vm2, %v1441_v0, 0.0 }
  0xd0   : > { %v414_v4 = vmin.f32 %v412_v58, %v413_v63  ;;  %v383_v21 = vsel %vm331_vm2, %v1443_v5, 0.0  ;;  %v1881_v44 = vsel %vm346_vm11, inf, %v1708_v30  ;;  %v1887_v45 = vsel %vm348_vm12, inf, %v1712_v31 }
  0xd1   : > { %v864_v10 = vmin.f32 %v862_v61, %v863_v2  ;;  %v382_v14 = vadd.f32 %v381_v11, %v380_v6  ;;  %v1911_v54 = vsel %vm350_vm13, inf, %v1701_v28  ;;  %v1925_v58 = vsel %vm352_vm14, inf, %v1743_v43 }
  0xd2   : > { %v415_v12 = vrot.slane %v414_v4, 1  ;;  %v417_v62 = vsel %vm331_vm2, %v1881_v44, inf  ;;  %v418_v0 = vsel %vm331_vm2, %v1887_v45, inf  ;;  %v419_v1 = vsel %vm331_vm2, %v1911_v54, inf }
  0xd3   : > { %v865_v19 = vrot.slane %v864_v10, 2  ;;  %v1867_v38 = vadd.f32 %v383_v21, %v382_v14  ;;  %v421_v2 = vsel %vm331_vm2, %v1925_v58, inf  ;;  %v420_v5 = vmin.f32 %v417_v62, %v419_v1 }
  0xd4   : > { %v1865_v25 = vmin.f32 %v414_v4, %v415_v12  ;;  %v422_v6 = vmin.f32 %v418_v0, %v421_v2  ;;  %v1985_v0 = vadd.f32 %v1691_v23, %v1687_v20  ;;  %v1989_v1 = vadd.f32 %v1697_v27, %v1689_v22 }
  0xd5   : > { %v866_v40 = vmin.f32 %v864_v10, %v865_v19  ;;  %v3274_v37 = vmov 0.0  }
  0xd6   : > { %3267 = vst [vmem:[#allocation16_spill] sm:$0xff] %v1865_v25  ;;  %vm430_vm15 = vcmp.eq.f32.partialorder %v1777_v15, %v1865_v25  ;;  %vm432_vm1 = vcmp.eq.f32.partialorder %v1780_v16, %v1865_v25  ;;  %vm434_vm3 = vcmp.eq.f32.partialorder %v1783_v17, %v1865_v25  ;;  %vm436_vm4 = vcmp.eq.f32.partialorder %v1789_v18, %v1865_v25 }
  0xd7   : > { %v1893_v47 = vsel %vm430_vm15, inf, %v1777_v15  ;;  %v1899_v48 = vsel %vm432_vm1, inf, %v1780_v16  ;;  %v1905_v53 = vsel %vm434_vm3, inf, %v1783_v17  ;;  %v1917_v55 = vsel %vm436_vm4, inf, %v1789_v18  ;;  %3271 = vst [vmem:[#allocation20_spill] sm:$0xff] %v1985_v0 }
  0xd8   : > { %v494_v56 = vmin.f32 %v1893_v47, %v1905_v53  ;;  %v867_v57 = vrot.slane %v866_v40, 1  ;;  %v495_v60 = vmin.f32 %v1899_v48, %v1917_v55  ;;  %3272 = vst [vmem:[#allocation21_spill] sm:$0xff] %v1989_v1  ;;  %v786_v20 = vsel %vm331_vm2, %v1989_v1, inf }
  0xd9   : > { %v1448_v15 = vsel %vm432_vm1, 1.0, %v3219_v9  ;;  %v1450_v32 = vsel %vm434_vm3, 1.0, %v3274_v37 }
  0xda   : > { %v1929_v61 = vmin.f32 %v866_v40, %v867_v57  ;;  %v496_v63 = vmin.f32 %v494_v56, %v495_v60  ;;  %v423_v56 = vmin.f32 %v420_v5, %v422_v6  ;;  %v1977_v57 = vadd.f32 %v1693_v24, %v1695_v26 }
  0xdc   : > { %3268 = vst [vmem:[#allocation17_spill] sm:$0xff] %v1929_v61  ;;  %vm882_vm5 = vcmp.eq.f32.partialorder %v1813_v49, %v1929_v61  ;;  %vm884_vm6 = vcmp.eq.f32.partialorder %v1816_v50, %v1929_v61  ;;  %vm886_vm7 = vcmp.eq.f32.partialorder %v1819_v51, %v1929_v61  ;;  %v497_v3 = vrot.slane %v496_v63, 4 }
  0xdd   : > { %vm888_vm8 = vcmp.eq.f32.partialorder %v1825_v52, %v1929_v61  ;;  %v1951_v4 = vsel %vm882_vm5, inf, %v1813_v49  ;;  %v1957_v11 = vsel %vm884_vm6, inf, %v1816_v50  ;;  %v1963_v12 = vsel %vm886_vm7, inf, %v1819_v51  ;;  %3269 = vst [vmem:[#allocation18_spill] sm:$0xff] %v1977_v57 }
  0xde   : > { %v498_v10 = vmin.f32 %v496_v63, %v497_v3  ;;  %v1969_v14 = vsel %vm888_vm8, inf, %v1825_v52  ;;  %v946_v19 = vmin.f32 %v1951_v4, %v1963_v12  ;;  %v1981_v63 = vadd.f32 %v1720_v34, %v1731_v39 }
  0xdf   : > { %v947_v40 = vmin.f32 %v1957_v11, %v1969_v14  ;;  %v424_v5 = vrot.slane %v423_v56, 4  ;;  %v787_v24 = vsel %vm331_vm2, %v1977_v57, inf  ;;  %v785_v39 = vsel %vm331_vm2, %v1985_v0, inf }
  0xe0   : > { %v499_v21 = vrot.slane %v498_v10, 2  ;;  %3270 = vst [vmem:[#allocation19_spill] sm:$0xff] %v1981_v63  ;;  %v789_v34 = vsel %vm331_vm2, %v1981_v63, inf  ;;  %v788_v22 = vmin.f32 %v785_v39, %v787_v24  ;;  %v1508_v50 = vsel %vm886_vm7, 1.0, %v3274_v37 }
  0xe1   : > { %v948_v62 = vmin.f32 %v946_v19, %v947_v40  ;;  %v425_v27 = vmin.f32 %v423_v56, %v424_v5  ;;  %v790_v6 = vmin.f32 %v786_v20, %v789_v34  ;;  %v825_v20 = vrot.slane %v1841_v59, 4 }
  0xe2   : > { %v500_v60 = vmin.f32 %v498_v10, %v499_v21  ;;  %v1446_v10 = vsel %vm430_vm15, 1.0, %v3219_v9 }
  0xe3   : > { %v949_v3 = vrot.slane %v948_v62, 4  ;;  %v426_v24 = vrot.slane %v425_v27, 2  ;;  %v791_v34 = vmin.f32 %v788_v22, %v790_v6  ;;  %v454_v16 = vadd.f32 %v1448_v15, %v1446_v10 }
  0xe4   : > { %v501_v2 = vrot.slane %v500_v60, 1  ;;  %v826_v22 = vadd.f32 %v825_v20, %v1841_v59 }
  0xe5   : > { %v950_v23 = vmin.f32 %v948_v62, %v949_v3  ;;  %v427_v31 = vmin.f32 %v425_v27, %v426_v24  ;;  %v792_v33 = vrot.slane %v791_v34, 4 }
  0xe6   : > { %v1993_v26 = vmin.f32 %v500_v60, %v501_v2  ;;  %v372_v2 = vrot.slane %v1810_v46, 4  ;;  %v827_v10 = vrot.slane %v826_v22, 2 }
  0xe7   : > { %v951_v62 = vrot.slane %v950_v23, 2  ;;  %v428_v17 = vrot.slane %v427_v31, 1  ;;  %v793_v59 = vmin.f32 %v791_v34, %v792_v33 }
  0xe8   : > { %3273 = vst [vmem:[#allocation22_spill] sm:$0xff] %v1993_v26  ;;  %vm516_vm9 = vcmp.eq.f32.partialorder %v1893_v47, %v1993_v26  ;;  %vm518_vm10 = vcmp.eq.f32.partialorder %v1899_v48, %v1993_v26  ;;  %vm520_vm11 = vcmp.eq.f32.partialorder %v1905_v53, %v1993_v26  ;;  %vm522_vm12 = vcmp.eq.f32.partialorder %v1917_v55, %v1993_v26 }
  0xe9   : > { %v2017_v19 = vsel %vm516_vm9, inf, %v1893_v47  ;;  %v2023_v21 = vsel %vm518_vm10, inf, %v1899_v48  ;;  %v2029_v40 = vsel %vm520_vm11, inf, %v1905_v53  ;;  %v2039_v56 = vsel %vm522_vm12, inf, %v1917_v55 }
  0xea   : > { %v580_v60 = vmin.f32 %v2017_v19, %v2029_v40  ;;  %v581_v3 = vmin.f32 %v2023_v21, %v2039_v56  ;;  %v952_v5 = vmin.f32 %v950_v23, %v951_v62  ;;  %v373_v42 = vadd.f32 %v372_v2, %v1810_v46 }
  0xeb   : > { %v455_v23 = vadd.f32 %v1450_v32, %v454_v16  ;;  %v1452_v32 = vsel %vm436_vm4, 1.0, %v3274_v37  ;;  %v2103_v24 = vmin.f32 %v427_v31, %v428_v17  ;;  %v794_v34 = vrot.slane %v793_v59, 2 }
  0xec   : > { %v582_v39 = vmin.f32 %v580_v60, %v581_v3  ;;  %v953_v9 = vrot.slane %v952_v5, 1  ;;  %v374_v46 = vrot.slane %v373_v42, 2  ;;  %v1504_v3 = vsel %vm882_vm5, 1.0, %v3274_v37 }
  0xed   : > { %v456_v27 = vadd.f32 %v1452_v32, %v455_v23  ;;  %3275 = vst [vmem:[#allocation23_spill] sm:$0xff] %v2103_v24  ;;  %vm431_vm3 = vcmp.eq.f32.partialorder %v1881_v44, %v2103_v24  ;;  %v795_v49 = vmin.f32 %v793_v59, %v794_v34  ;;  %vm433_vm4 = vcmp.eq.f32.partialorder %v1887_v45, %v2103_v24 }
  0xee   : > { %v583_v35 = vrot.slane %v582_v39, 4  ;;  %v2052_v43 = vmin.f32 %v952_v5, %v953_v9  ;;  %v375_v60 = vadd.f32 %v374_v46, %v373_v42  ;;  %v1506_v5 = vsel %vm884_vm6, 1.0, %v3274_v37 }
  0xef   : > { %v457_v16 = vrot.slane %v456_v27, 4  ;;  %v385_v42 = vrot.slane %v1867_v38, 4  ;;  %v906_v46 = vadd.f32 %v1506_v5, %v1504_v3  ;;  %vm435_vm5 = vcmp.eq.f32.partialorder %v1911_v54, %v2103_v24 }
  0xf0   : > { %vm968_vm13 = vcmp.eq.f32.partialorder %v1951_v4, %v2052_v43  ;;  %vm970_vm14 = vcmp.eq.f32.partialorder %v1957_v11, %v2052_v43  ;;  %vm972_vm15 = vcmp.eq.f32.partialorder %v1963_v12, %v2052_v43  ;;  %v584_v6 = vmin.f32 %v582_v39, %v583_v35 }
  0xf1   : > { %vm974_vm1 = vcmp.eq.f32.partialorder %v1969_v14, %v2052_v43  ;;  %v2071_v9 = vsel %vm968_vm13, inf, %v1951_v4  ;;  %v2077_v35 = vsel %vm970_vm14, inf, %v1957_v11  ;;  %v2083_v18 = vsel %vm972_vm15, inf, %v1963_v12 }
  0xf2   : > { %v2089_v15 = vsel %vm974_vm1, inf, %v1969_v14  ;;  %v1032_v33 = vmin.f32 %v2071_v9, %v2083_v18  ;;  %v585_v62 = vrot.slane %v584_v6, 2  ;;  %v828_v39 = vadd.f32 %v827_v10, %v826_v22 }
  0xf3   : > { %v1033_v2 = vmin.f32 %v2077_v35, %v2089_v15  ;;  %v376_v32 = vrot.slane %v375_v60, 1  ;;  %v458_v28 = vadd.f32 %v457_v16, %v456_v27  ;;  %v386_v30 = vadd.f32 %v385_v42, %v1867_v38 }
  0xf4   : > { %v586_v23 = vmin.f32 %v584_v6, %v585_v62  ;;  %v829_v31 = vrot.slane %v828_v39, 1  ;;  %vm437_vm6 = vcmp.eq.f32.partialorder %v1925_v58, %v2103_v24  ;;  %v1510_v38 = vsel %vm888_vm8, 1.0, %v3274_v37 }
  0xf5   : > { %v1034_v20 = vmin.f32 %v1032_v33, %v1033_v2  ;;  %v907_v17 = vadd.f32 %v1508_v50, %v906_v46  ;;  %v2127_v59 = vsel %vm431_vm3, inf, %v1881_v44  ;;  %v2133_v51 = vsel %vm433_vm4, inf, %v1887_v45 }
  0xf6   : > { %v587_v6 = vrot.slane %v586_v23, 1  ;;  %v2139_v52 = vsel %vm435_vm5, inf, %v1911_v54  ;;  %v796_v10 = vrot.slane %v795_v49, 1  ;;  %v459_v33 = vrot.slane %v458_v28, 2 }
  0xf7   : > { %v1035_v22 = vrot.slane %v1034_v20, 4  ;;  %v1456_v62 = vsel %vm516_vm9, 1.0, %v3274_v37  ;;  %v387_v2 = vrot.slane %v386_v30, 2  ;;  %v2149_v3 = vsel %vm437_vm6, inf, %v1925_v58 }
  0xf8   : > { %v1458_v5 = vsel %vm518_vm10, 1.0, %v3274_v37  ;;  %v503_v34 = vsel %vm331_vm2, %v2127_v59, inf  ;;  %v504_v16 = vsel %vm331_vm2, %v2133_v51, inf  ;;  %v505_v47 = vsel %vm331_vm2, %v2139_v52, inf }
  0xf9   : > { %v1036_v27 = vmin.f32 %v1034_v20, %v1035_v22  ;;  %v2161_v42 = vmin.f32 %v586_v23, %v587_v6  ;;  %v908_v20 = vadd.f32 %v1510_v38, %v907_v17  ;;  %v506_v46 = vmin.f32 %v503_v34, %v505_v47 }
  0xfa   : > { %v507_v22 = vsel %vm331_vm2, %v2149_v3, inf  ;;  %v2165_v36 = vmin.f32 %v795_v49, %v796_v10  ;;  %v540_v48 = vadd.f32 %v1458_v5, %v1456_v62  ;;  %v2167_v13 = vadd.f32 %v376_v32, %v375_v60 }
  0xfb   : > { %v1037_v50 = vrot.slane %v1036_v27, 2  ;;  %v508_v61 = vmin.f32 %v504_v16, %v507_v22  ;;  %v2169_v41 = vadd.f32 %v459_v33, %v458_v28  ;;  %v2171_v29 = vadd.f32 %v829_v31, %v828_v39 }
  0xfc   : > { %v2173_v25 = vadd.f32 %v387_v2, %v386_v30  ;;  %v1460_v23 = vsel %vm520_vm11, 1.0, %v3274_v37  ;;  %vm602_vm7 = vcmp.eq.f32.partialorder %v2017_v19, %v2161_v42  ;;  %v909_v49 = vrot.slane %v908_v20, 4 }
  0xfd   : > { %v509_v6 = vmin.f32 %v506_v46, %v508_v61  ;;  %vm604_vm8 = vcmp.eq.f32.partialorder %v2023_v21, %v2161_v42  ;;  %v1038_v60 = vmin.f32 %v1036_v27, %v1037_v50  ;;  %vm799_vm9 = vcmp.eq.f32.partialorder %v1985_v0, %v2165_v36 }
  0xfe   : > { %vm801_vm10 = vcmp.eq.f32.partialorder %v1989_v1, %v2165_v36  ;;  %v541_v28 = vadd.f32 %v1460_v23, %v540_v48  ;;  %vm606_vm0 = vcmp.eq.f32.partialorder %v2029_v40, %v2161_v42  ;;  %vm608_vm11 = vcmp.eq.f32.partialorder %v2039_v56, %v2161_v42 }
  0xff   : > { %v1514_v30 = vsel %vm968_vm13, 1.0, %v3274_v37  ;;  %v1516_v53 = vsel %vm970_vm14, 1.0, %v3274_v37  ;;  %v1447_v61 = vsel %vm431_vm3, 1.0, %v3274_v37  ;;  %v1449_v39 = vsel %vm433_vm4, 1.0, %v3274_v37 }
 0x100   : > { %v510_v32 = vrot.slane %v509_v6, 4  ;;  %v2211_v4 = vsel %vm602_vm7, inf, %v2017_v19  ;;  %v2217_v11 = vsel %vm604_vm8, inf, %v2023_v21  ;;  %v1495_v44 = vsel %vm799_vm9, 1.0, %v3274_v37 }
 0x101   : > { %v1497_v45 = vsel %vm801_vm10, 1.0, %v3274_v37  ;;  %v2231_v31 = vsel %vm606_vm0, inf, %v2029_v40  ;;  %v2237_v38 = vsel %vm608_vm11, inf, %v2039_v56  ;;  %v1039_v17 = vrot.slane %v1038_v60, 1 }
 0x102   : > { %3276 = vst [vmem:[#allocation24_spill] sm:$0xff] %v2231_v31  ;;  %vm803_vm13 = vcmp.eq.f32.partialorder %v1977_v57, %v2165_v36  ;;  %v1462_v27 = vsel %vm522_vm12, 1.0, %v3274_v37  ;;  %v992_v10 = vadd.f32 %v1516_v53, %v1514_v30  ;;  %v463_v62 = vsel %vm331_vm2, %v1447_v61, 0.0 }
 0x103   : > { %v511_v2 = vmin.f32 %v509_v6, %v510_v32  ;;  %vm805_vm14 = vcmp.eq.f32.partialorder %v1981_v63, %v2165_v36  ;;  %v831_v5 = vsel %vm331_vm2, %v1495_v44, 0.0  ;;  %v832_v34 = vsel %vm331_vm2, %v1497_v45, 0.0 }
 0x104   : > { %v666_v16 = vmin.f32 %v2211_v4, %v2231_v31  ;;  %v667_v55 = vmin.f32 %v2217_v11, %v2237_v38  ;;  %v464_v47 = vsel %vm331_vm2, %v1449_v39, 0.0  ;;  %v1499_v46 = vsel %vm803_vm13, 1.0, %v3274_v37 }
 0x105   : > { %v2260_v50 = vadd.f32 %v1462_v27, %v541_v28  ;;  %v2262_v22 = vadd.f32 %v909_v49, %v908_v20  ;;  %v2264_v48 = vmin.f32 %v1038_v60, %v1039_v17  ;;  %v1451_v23 = vsel %vm435_vm5, 1.0, %v3274_v37 }
 0x106   : > { %v1518_v6 = vsel %vm972_vm15, 1.0, %v3274_v37  ;;  %v512_v30 = vrot.slane %v511_v2, 2  ;;  %v1501_v28 = vsel %vm805_vm14, 1.0, %v3274_v37  ;;  %v833_v20 = vadd.f32 %v832_v34, %v831_v5 }
 0x107   : > { %v993_v49 = vadd.f32 %v1518_v6, %v992_v10  ;;  %v1453_v60 = vsel %vm437_vm6, 1.0, %v3274_v37  ;;  %v465_v54 = vadd.f32 %v464_v47, %v463_v62  ;;  %v834_v53 = vsel %vm331_vm2, %v1499_v46, 0.0 }
 0x108   : > { %v668_v61 = vmin.f32 %v666_v16, %v667_v55  ;;  %v466_v12 = vsel %vm331_vm2, %v1451_v23, 0.0  ;;  %v513_v39 = vmin.f32 %v511_v2, %v512_v30  ;;  %v835_v32 = vadd.f32 %v834_v53, %v833_v20 }
 0x109   : > { %v1466_v44 = vsel %vm602_vm7, 1.0, %v3274_v37  ;;  %vm1054_vm12 = vcmp.eq.f32.partialorder %v2071_v9, %v2264_v48  ;;  %vm1056_vm15 = vcmp.eq.f32.partialorder %v2077_v35, %v2264_v48  ;;  %v836_v58 = vsel %vm331_vm2, %v1501_v28, 0.0 }
 0x10a   : > { %vm1058_vm3 = vcmp.eq.f32.partialorder %v2083_v18, %v2264_v48  ;;  %vm1060_vm4 = vcmp.eq.f32.partialorder %v2089_v15, %v2264_v48  ;;  %v514_v45 = vrot.slane %v513_v39, 1  ;;  %v837_v17 = vadd.f32 %v836_v58, %v835_v32 }
 0x10b   : > { %v1468_v19 = vsel %vm604_vm8, 1.0, %v3274_v37  ;;  %v2305_v27 = vsel %vm799_vm9, inf, %v1985_v0  ;;  %v2311_v10 = vsel %vm801_vm10, inf, %v1989_v1  ;;  %v2317_v62 = vsel %vm803_vm13, inf, %v1977_v57 }
 0x10c   : > { %v669_v21 = vrot.slane %v668_v61, 4  ;;  %v467_v2 = vadd.f32 %v466_v12, %v465_v54  ;;  %v2319_v5 = vmin.f32 %v513_v39, %v514_v45  ;;  %v2325_v34 = vsel %vm805_vm14, inf, %v1981_v63 }
 0x10d   : > { %v2331_v16 = vsel %vm1054_vm12, inf, %v2071_v9  ;;  %v2337_v55 = vsel %vm1056_vm15, inf, %v2077_v35  ;;  %v2343_v47 = vsel %vm1058_vm3, inf, %v2083_v18  ;;  %v2349_v46 = vsel %vm1060_vm4, inf, %v2089_v15 }
 0x10e   : > { %3277 = vst [vmem:[#allocation25_spill] sm:$0xff] %v2331_v16  ;;  %vm517_vm5 = vcmp.eq.f32.partialorder %v2127_v59, %v2319_v5  ;;  %v869_v23 = vsel %vm331_vm2, %v2305_v27, inf  ;;  %v870_v6 = vsel %vm331_vm2, %v2311_v10, inf  ;;  %v871_v30 = vsel %vm331_vm2, %v2317_v62, inf }
 0x10f   : > { %3278 = vst [vmem:[#allocation26_spill] sm:$0xff] %v2343_v47  ;;  %vm519_vm6 = vcmp.eq.f32.partialorder %v2133_v51, %v2319_v5  ;;  %vm521_vm7 = vcmp.eq.f32.partialorder %v2139_v52, %v2319_v5  ;;  %vm523_vm8 = vcmp.eq.f32.partialorder %v2149_v3, %v2319_v5  ;;  %v873_v28 = vsel %vm331_vm2, %v2325_v34, inf }
 0x110   : > { %3279 = vst [vmem:[#allocation27_spill] sm:$0xff] %v2349_v46  ;;  %v626_v20 = vadd.f32 %v1468_v19, %v1466_v44  ;;  %v1118_v54 = vmin.f32 %v2331_v16, %v2343_v47  ;;  %v1119_v53 = vmin.f32 %v2337_v55, %v2349_v46  ;;  %v468_v12 = vsel %vm331_vm2, %v1453_v60, 0.0 }
 0x111   : > { %v469_v39 = vadd.f32 %v468_v12, %v467_v2  ;;  %v2376_v32 = vsel %vm517_vm5, inf, %v2127_v59  ;;  %v838_v58 = vrot.slane %v837_v17, 4  ;;  %v872_v45 = vmin.f32 %v869_v23, %v871_v30 }
 0x112   : > { %v2382_v44 = vsel %vm519_vm6, inf, %v2133_v51  ;;  %v2388_v60 = vsel %vm521_vm7, inf, %v2139_v52  ;;  %v2394_v19 = vsel %vm523_vm8, inf, %v2149_v3  ;;  %v874_v2 = vmin.f32 %v870_v6, %v873_v28 }
 0x113   : > { %v670_v23 = vmin.f32 %v668_v61, %v669_v21  ;;  %v589_v30 = vsel %vm331_vm2, %v2376_v32, inf  ;;  %v590_v12 = vsel %vm331_vm2, %v2382_v44, inf  ;;  %v591_v33 = vsel %vm331_vm2, %v2388_v60, inf }
 0x114   : > { %v543_v63 = vrot.slane %v2260_v50, 4  ;;  %v1120_v57 = vmin.f32 %v1118_v54, %v1119_v53  ;;  %v592_v1 = vmin.f32 %v589_v30, %v591_v33  ;;  %v593_v0 = vsel %vm331_vm2, %v2394_v19, inf }
 0x115   : > { %v1470_v61 = vsel %vm606_vm0, 1.0, %v3274_v37  ;;  %v1520_v21 = vsel %vm974_vm1, 1.0, %v3274_v37  ;;  %v594_v6 = vmin.f32 %v590_v12, %v593_v0  ;;  %v839_v28 = vadd.f32 %v838_v58, %v837_v17 }
 0x116   : > { %v627_v24 = vadd.f32 %v1470_v61, %v626_v20  ;;  %v994_v26 = vadd.f32 %v1520_v21, %v993_v49  ;;  %v470_v47 = vrot.slane %v469_v39, 4  ;;  %v875_v54 = vmin.f32 %v872_v45, %v874_v2 }
 0x117   : > { %v461_v33 = vrot.slane %v2169_v41, 1  ;;  %v671_v53 = vrot.slane %v670_v23, 2  ;;  %v595_v30 = vmin.f32 %v592_v1, %v594_v6  ;;  %v840_v16 = vrot.slane %v839_v28, 2 }
 0x118   : > { %v911_v46 = vrot.slane %v2262_v22, 2  ;;  %v1121_v40 = vrot.slane %v1120_v57, 4  ;;  %v3280_v31 = vrot.slane %v2173_v25, 1  ;;  %v876_v14 = vrot.slane %v875_v54, 4 }
 0x119   : > { %v544_v0 = vadd.f32 %v543_v63, %v2260_v50  ;;  %v1472_v49 = vsel %vm608_vm11, 1.0, %v3274_v37  ;;  %v596_v17 = vrot.slane %v595_v30, 4  ;;  %v841_v20 = vadd.f32 %v840_v16, %v839_v28 }
 0x11a   : > { %v2418_v8 = vadd.f32 %v3280_v31, %v2173_v25  ;;  %v628_v1 = vadd.f32 %v1472_v49, %v627_v24  ;;  %v995_v58 = vrot.slane %v994_v26, 4  ;;  %v471_v45 = vadd.f32 %v470_v47, %v469_v39 }
 0x11b   : > { %v877_v2 = vmin.f32 %v875_v54, %v876_v14  ;;  %v2426_v12 = vadd.f32 %v461_v33, %v2169_v41  ;;  %v672_v61 = vmin.f32 %v670_v23, %v671_v53  ;;  %v597_v25 = vmin.f32 %v595_v30, %v596_v17 }
 0x11c   : > { %v842_v31 = vrot.slane %v841_v20, 1  ;;  %v1122_v21 = vmin.f32 %v1120_v57, %v1121_v40  ;;  %v1457_v63 = vsel %vm517_vm5, 1.0, %v3274_v37  ;;  %v1459_v56 = vsel %vm519_vm6, 1.0, %v3274_v37 }
 0x11d   : > { %v878_v24 = vrot.slane %v877_v2, 2  ;;  %v545_v50 = vrot.slane %v544_v0, 2  ;;  %v2437_v16 = vadd.f32 %v911_v46, %v2262_v22  ;;  %v598_v41 = vrot.slane %v597_v25, 2 }
 0x11e   : > { %v2439_v47 = vadd.f32 %v842_v31, %v841_v20  ;;  %v629_v39 = vrot.slane %v628_v1, 4  ;;  %v2441_v57 = vadd.f32 %v995_v58, %v994_v26  ;;  %v472_v23 = vrot.slane %v471_v45, 2 }
 0x11f   : > { %v879_v6 = vmin.f32 %v877_v2, %v878_v24  ;;  %v549_v59 = vsel %vm331_vm2, %v1457_v63, 0.0  ;;  %v550_v28 = vsel %vm331_vm2, %v1459_v56, 0.0  ;;  %v599_v54 = vmin.f32 %v597_v25, %v598_v41 }
 0x120   : > { %vm1503_vm0 = vcmp.gt.f32.partialorder %v2439_v47, 4.0  ;;  %v673_v51 = vrot.slane %v672_v61, 1  ;;  %v1123_v33 = vrot.slane %v1122_v21, 2  ;;  %v2449_v46 = vadd.f32 %v545_v50, %v544_v0 }
 0x121   : > { %v880_v53 = vrot.slane %v879_v6, 1  ;;  %v2447_v22 = vsel %vm1503_vm0, %v2165_v36, inf  ;;  %v913_v26 = vrot.slane %v2437_v16, 1  ;;  %v1461_v30 = vsel %vm521_vm7, 1.0, %v3274_v37 }
 0x122   : > { %v600_v40 = vrot.slane %v599_v54, 1  ;;  %v2456_v14 = vadd.f32 %v629_v39, %v628_v1  ;;  %v997_v49 = vrot.slane %v2441_v57, 2  ;;  %v1463_v36 = vsel %vm523_vm8, 1.0, %v3274_v37 }
 0x123   : > { %v551_v17 = vadd.f32 %v550_v28, %v549_v59  ;;  %v1524_v0 = vsel %vm1054_vm12, 1.0, %v3274_v37  ;;  %v2467_v20 = vadd.f32 %v472_v23, %v471_v45  ;;  %v2471_v58 = vmin.f32 %v879_v6, %v880_v53 }
 0x124   : > { %v2469_v52 = vmin.f32 %v599_v54, %v600_v40  ;;  %v2473_v1 = vmin.f32 %v672_v61, %v673_v51  ;;  %v1526_v3 = vsel %vm1056_vm15, 1.0, %v3274_v37  ;;  %v2479_v2 = vmin.f32 %v1122_v21, %v1123_v33 }
 0x125   : > { %v552_v25 = vsel %vm331_vm2, %v1461_v30, 0.0  ;;  %v554_v9 = vsel %vm331_vm2, %v1463_v36, 0.0  ;;  %vm883_vm13 = vcmp.eq.f32.partialorder %v2305_v27, %v2471_v58  ;;  %vm885_vm14 = vcmp.eq.f32.partialorder %v2311_v10, %v2471_v58 }
 0x126   : > { %vm603_vm1 = vcmp.eq.f32.partialorder %v2376_v32, %v2469_v52  ;;  %vm605_vm9 = vcmp.eq.f32.partialorder %v2382_v44, %v2469_v52  ;;  %vm607_vm10 = vcmp.eq.f32.partialorder %v2388_v60, %v2469_v52  ;;  %v553_v45 = vadd.f32 %v552_v25, %v551_v17 }
 0x127   : > { %vm609_vm11 = vcmp.eq.f32.partialorder %v2394_v19, %v2469_v52  ;;  %v1467_v35 = vsel %vm603_vm1, 1.0, %v3274_v37  ;;  %v1469_v61 = vsel %vm605_vm9, 1.0, %v3274_v37  ;;  %vm887_vm12 = vcmp.eq.f32.partialorder %v2317_v62, %v2471_v58 }
 0x128   : > { %v635_v31 = vsel %vm331_vm2, %v1467_v35, 0.0  ;;  %v636_v21 = vsel %vm331_vm2, %v1469_v61, 0.0  ;;  %v2502_v63 = vsel %vm603_vm1, inf, %v2376_v32  ;;  %v2505_v56 = vsel %vm605_vm9, inf, %v2382_v44 }
 0x129   : > { %v2511_v24 = vsel %vm607_vm10, inf, %v2388_v60  ;;  %v2517_v50 = vsel %vm609_vm11, inf, %v2394_v19  ;;  %v675_v41 = vsel %vm331_vm2, %v2502_v63, inf  ;;  %v676_v32 = vsel %vm331_vm2, %v2505_v56, inf }
 0x12a   : > { %v677_v44 = vsel %vm331_vm2, %v2511_v24, inf  ;;  %v679_v23 = vsel %vm331_vm2, %v2517_v50, inf  ;;  %vm889_vm15 = vcmp.eq.f32.partialorder %v2325_v34, %v2471_v58  ;;  %v1505_v6 = vsel %vm883_vm13, 1.0, %v3274_v37 }
 0x12b   : > { %v678_v39 = vmin.f32 %v675_v41, %v677_v44  ;;  %v555_v59 = vadd.f32 %v554_v9, %v553_v45  ;;  %v680_v28 = vmin.f32 %v676_v32, %v679_v23  ;;  %v1507_v54 = vsel %vm885_vm14, 1.0, %v3274_v37 }
 0x12c   : > { %v1509_v51 = vsel %vm887_vm12, 1.0, %v3274_v37  ;;  %v1471_v33 = vsel %vm607_vm10, 1.0, %v3274_v37  ;;  %v637_v53 = vadd.f32 %v636_v21, %v635_v31  ;;  %v915_v30 = vsel %vm331_vm2, %v1505_v6, 0.0 }
 0x12d   : > { %v916_v40 = vsel %vm331_vm2, %v1507_v54, 0.0  ;;  %v681_v36 = vmin.f32 %v678_v39, %v680_v28  ;;  %v1511_v17 = vsel %vm889_vm15, 1.0, %v3274_v37  ;;  %v2555_v9 = vsel %vm883_vm13, inf, %v2305_v27 }
 0x12e   : > { %v917_v25 = vadd.f32 %v916_v40, %v915_v30  ;;  %v918_v60 = vsel %vm331_vm2, %v1509_v51, 0.0  ;;  %v2562_v45 = vsel %vm885_vm14, inf, %v2311_v10  ;;  %v2568_v35 = vsel %vm887_vm12, inf, %v2317_v62 }
 0x12f   : > { %v2574_v27 = vsel %vm889_vm15, inf, %v2325_v34  ;;  %v682_v61 = vrot.slane %v681_v36, 4  ;;  %v955_v21 = vsel %vm331_vm2, %v2555_v9, inf  ;;  %v956_v10 = vsel %vm331_vm2, %v2562_v45, inf }
 0x130   : > { %v919_v31 = vadd.f32 %v918_v60, %v917_v25  ;;  %v556_v41 = vrot.slane %v555_v59, 4  ;;  %v920_v32 = vsel %vm331_vm2, %v1511_v17, 0.0  ;;  %v957_v62 = vsel %vm331_vm2, %v2568_v35, inf }
 0x131   : > { %v959_v44 = vsel %vm331_vm2, %v2574_v27, inf  ;;  %v683_v39 = vmin.f32 %v681_v36, %v682_v61  ;;  %v958_v23 = vmin.f32 %v955_v21, %v957_v62  ;;  %v1078_v28 = vadd.f32 %v1526_v3, %v1524_v0 }
 0x132   : > { %v921_v34 = vadd.f32 %v920_v32, %v919_v31  ;;  %v960_v6 = vmin.f32 %v956_v10, %v959_v44  ;;  %v1125_v54 = vrot.slane %v2479_v2, 1  ;;  %v1473_v51 = vsel %vm609_vm11, 1.0, %v3274_v37 }
 0x133   : > { %v638_v30 = vsel %vm331_vm2, %v1471_v33, 0.0  ;;  %v684_v17 = vrot.slane %v683_v39, 2  ;;  %vm688_vm5 = vcmp.eq.f32.partialorder %v2211_v4, %v2473_v1  ;;  %v1528_v0 = vsel %vm1058_vm3, 1.0, %v3274_v37 }
 0x134   : > { %v639_v40 = vadd.f32 %v638_v30, %v637_v53  ;;  %v922_v25 = vrot.slane %v921_v34, 4  ;;  %v961_v60 = vmin.f32 %v958_v23, %v960_v6  ;;  %v1530_v19 = vsel %vm1060_vm4, 1.0, %v3274_v37 }
 0x135   : > { %v474_v3 = vrot.slane %v2467_v20, 1  ;;  %vm690_vm6 = vcmp.eq.f32.partialorder %v2217_v11, %v2473_v1  ;;  %v557_v33 = vadd.f32 %v556_v41, %v555_v59  ;;  %v685_v53 = vmin.f32 %v683_v39, %v684_v17 }
 0x136   : > { %v962_v36 = vrot.slane %v961_v60, 4  ;;  %v1079_v61 = vadd.f32 %v1528_v0, %v1078_v28  ;;  %v2605_v31 = vmin.f32 %v2479_v2, %v1125_v54  ;;  %v640_v18 = vsel %vm331_vm2, %v1473_v51, 0.0 }
 0x137   : > { %v2610_v21 = vadd.f32 %v2426_v12, %v2167_v13  ;;  %vm694_vm3 = vcmp.eq.f32.partialorder %v2237_v38, %v2473_v1  ;;  %v641_v15 = vadd.f32 %v640_v18, %v639_v40  ;;  %v923_v10 = vadd.f32 %v922_v25, %v921_v34 }
 0x138   : > { %v963_v32 = vmin.f32 %v961_v60, %v962_v36  ;;  %v1476_v11 = vsel %vm688_vm5, 1.0, %v3274_v37  ;;  %v1478_v2 = vsel %vm690_vm6, 1.0, %v3274_v37  ;;  %v475_v59 = vadd.f32 %v474_v3, %v2467_v20 }
 0x139   : > { %v998_v12 = vadd.f32 %v997_v49, %v2441_v57  ;;  %v558_v41 = vrot.slane %v557_v33, 2  ;;  %v686_v62 = vrot.slane %v685_v53, 1  ;;  %v547_v38 = vrot.slane %v2449_v46, 1 }
 0x13a   : > { %v964_v44 = vrot.slane %v963_v32, 2  ;;  %v2625_v39 = vsel %vm694_vm3, 1.0, %v3274_v37  ;;  %v2627_v34 = vadd.f32 %v1530_v19, %v1079_v61  ;;  %vm1142_vm4 = vcmp.eq.f32.partialorder %v2337_v55, %v2605_v31  ;;  %v3284_v55 = vld [vmem:[#allocation16_spill] sm:$0xff] }
 0x13b   : > { %vm1454_vm7 = vcmp.gt.f32.partialorder %v2610_v21, 4.0  ;;  %v642_v4 = vrot.slane %v641_v15, 4  ;;  %v924_v20 = vrot.slane %v923_v10, 2  ;;  %vm1444_vm8 = vcmp.gt.f32.partialorder %v2167_v13, 4.0 }
 0x13c   : > { %vm476_vm0 = vcmp.le.f32.partialorder %v2167_v13, 4.0  ;;  %v965_v57 = vmin.f32 %v963_v32, %v964_v44  ;;  %vm1502_vm1 = vcmp.gt.f32.partialorder %v2171_v29, 4.0  ;;  %v914_v49 = vadd.f32 %v913_v26, %v2437_v16  ;;  %v1235_v32 = vld [vmem:[%s3217_s3 + $0x78] sm:$0xff] }
 0x13d   : > { %v999_v23 = vrot.slane %v998_v12, 1  ;;  %v2638_v6 = vadd.f32 %v1478_v2, %v1476_v11  ;;  %v2640_v28 = vadd.f32 %v558_v41, %v557_v33  ;;  %v2642_v54 = vmin.f32 %v685_v53, %v686_v62  ;;  %vm2644_vm9 = vmand %vm476_vm0, %vm1454_vm7  ;;  %1272 = vmatpush.msrb.mxu0 %v1235_v32  ;;  %1572 = vmatpush.msra.mxu2 %v1235_v32  ;;  %v1232_v32 = vld [vmem:[%s3217_s3 + $0x60] sm:$0xff] }
 0x13e   : > { %v548_v13 = vadd.f32 %v547_v38, %v2449_v46  ;;  %v1081_v30 = vrot.slane %v2627_v34, 4  ;;  %v2654_v16 = vsel %vm1142_vm4, 1.0, %v3274_v37  ;;  %v966_v26 = vrot.slane %v965_v57, 1  ;;  %v3283_v46 = vld [vmem:[#allocation14_spill] sm:$0xff] }
 0x13f   : > { %v2657_v40 = vsel %vm1444_vm8, %v1759_v7, inf  ;;  %v2659_v17 = vadd.f32 %v642_v4, %v641_v15  ;;  %v2661_v25 = vadd.f32 %v924_v20, %v923_v10  ;;  %v2664_v60 = vadd.f32 %v475_v59, %v2418_v8  ;;  %v1234_v4 = vld [vmem:[%s3217_s3 + $0x70] sm:$0xff] }
 0x140   : > { %v2667_v0 = vsel %vm1502_vm1, %v3283_v46, inf  ;;  %v2669_v19 = vmin.f32 %v965_v57, %v966_v26  ;;  %v484_v3 = vsel %vm2644_vm9, %v3284_v55, %v2657_v40  ;;  %v2676_v7 = vadd.f32 %v914_v49, %v2171_v29  ;;  %1273 = vmatpush.msrb.mxu0 %v1234_v4  ;;  %1573 = vmatpush.msra.mxu2 %v1234_v4 }
 0x141   : > { %v1000_v33 = vadd.f32 %v999_v23, %v998_v12  ;;  %vm691_vm10 = vcmp.eq.f32.partialorder %v2505_v56, %v2642_v54  ;;  %vm695_vm11 = vcmp.eq.f32.partialorder %v2517_v50, %v2642_v54  ;;  %v2683_v53 = vadd.f32 %v548_v13, %v2610_v21  ;;  %v3287_v56 = vld [vmem:[#allocation25_spill] sm:$0xff] }
 0x142   : > { %v560_v36 = vrot.slane %v2640_v28, 1  ;;  %vm969_vm13 = vcmp.eq.f32.partialorder %v2555_v9, %v2669_v19  ;;  %vm971_vm14 = vcmp.eq.f32.partialorder %v2562_v45, %v2669_v19  ;;  %vm973_vm12 = vcmp.eq.f32.partialorder %v2568_v35, %v2669_v19 }
 0x143   : > { %vm975_vm15 = vcmp.eq.f32.partialorder %v2574_v27, %v2669_v19  ;;  %v926_v61 = vrot.slane %v2661_v25, 1  ;;  %v1515_v18 = vsel %vm969_vm13, 1.0, %v3274_v37  ;;  %v1517_v15 = vsel %vm971_vm14, 1.0, %v3274_v37 }
 0x144   : > { %v1519_v10 = vsel %vm973_vm12, 1.0, %v3274_v37  ;;  %v1521_v11 = vsel %vm975_vm15, 1.0, %v3274_v37  ;;  %v1001_v2 = vsel %vm331_vm2, %v1515_v18, 0.0  ;;  %v1002_v59 = vsel %vm331_vm2, %v1517_v15, 0.0 }
 0x145   : > { %v1004_v12 = vsel %vm331_vm2, %v1519_v10, 0.0  ;;  %v1003_v41 = vadd.f32 %v1002_v59, %v1001_v2  ;;  %v2721_v62 = vsel %vm969_vm13, inf, %v2555_v9  ;;  %v2727_v44 = vsel %vm971_vm14, inf, %v2562_v45  ;;  %v3285_v59 = vld [vmem:[#allocation24_spill] sm:$0xff] }
 0x146   : > { %v2733_v38 = vsel %vm973_vm12, inf, %v2568_v35  ;;  %v2742_v9 = vsel %vm975_vm15, inf, %v2574_v27  ;;  %v1041_v45 = vsel %vm331_vm2, %v2721_v62, inf  ;;  %v1042_v20 = vsel %vm331_vm2, %v2727_v44, inf  ;;  %v1233_v27 = vld [vmem:[%s3217_s3 + $0x68] sm:$0xff] }
 0x147   : > { %v1043_v35 = vsel %vm331_vm2, %v2733_v38, inf  ;;  %v1005_v57 = vadd.f32 %v1004_v12, %v1003_v41  ;;  %v1045_v23 = vsel %vm331_vm2, %v2742_v9, inf  ;;  %v631_v13 = vrot.slane %v2456_v14, 2  ;;  %1274 = vmatpush.msrb.mxu0 %v1233_v27  ;;  %1574 = vmatpush.msra.mxu2 %v1233_v27  ;;  %v1231_v41 = vld [vmem:[%s3217_s3 + $0x58] sm:$0xff] }
 0x148   : > { %v1044_v49 = vmin.f32 %v1041_v45, %v1043_v35  ;;  %v1006_v26 = vsel %vm331_vm2, %v1521_v11, 0.0  ;;  %v1046_v46 = vmin.f32 %v1042_v20, %v1045_v23  ;;  %vm562_vm5 = vcmp.le.f32.partialorder %v2610_v21, 4.0  ;;  %v1242_v21 = vld [vmem:[%s3217_s3 + $0xb0] sm:$0xff] }
 0x149   : > { %v2759_v18 = vadd.f32 %v1000_v33, %v2676_v7  ;;  %v1082_v15 = vadd.f32 %v1081_v30, %v2627_v34  ;;  %v1007_v10 = vadd.f32 %v1006_v26, %v1005_v57  ;;  %v632_v2 = vadd.f32 %v631_v13, %v2456_v14  ;;  %1275 = vmatpush.msrb.mxu0 %v1232_v32  ;;  %v3286_v14 = vld [vmem:[#allocation27_spill] sm:$0xff]  ;;  %v3288_v26 = vld [vmem:[#allocation26_spill] sm:$0xff] }
 0x14a   : > { %vm692_vm6 = vcmp.eq.f32.partialorder %v3285_v59, %v2473_v1  ;;  %v644_v11 = vrot.slane %v2659_v17, 2  ;;  %vm689_vm3 = vcmp.eq.f32.partialorder %v2502_v63, %v2642_v54  ;;  %v1479_v34 = vsel %vm691_vm10, 1.0, %v3274_v37  ;;  %1575 = vmatpush.msra.mxu2 %v1232_v32 }
 0x14b   : > { %v1483_v30 = vsel %vm695_vm11, 1.0, %v3274_v37  ;;  %v1047_v33 = vmin.f32 %v1044_v49, %v1046_v46  ;;  %vm1146_vm4 = vcmp.eq.f32.partialorder %v3286_v14, %v2605_v31  ;;  %v1008_v12 = vrot.slane %v1007_v10, 4  ;;  %1276 = vmatpush.msrb.mxu0 %v1231_v41 }
 0x14c   : > { %v633_v4 = vrot.slane %v632_v2, 1  ;;  %vm1140_vm7 = vcmp.eq.f32.partialorder %v3287_v56, %v2605_v31  ;;  %v927_v45 = vadd.f32 %v926_v61, %v2661_v25  ;;  %1576 = vmatpush.msra.mxu2 %v1231_v41  ;;  %vm1464_vm8 = vcmp.gt.f32.partialorder %v2683_v53, 4.0  ;;  %v1230_v25 = vld [vmem:[%s3217_s3 + $0x50] sm:$0xff] }
 0x14d   : > { %v1048_v20 = vrot.slane %v1047_v33, 4  ;;  %v1480_v50 = vsel %vm692_vm6, 1.0, %v3274_v37  ;;  %v1083_v35 = vrot.slane %v1082_v15, 2  ;;  %v722_v57 = vsel %vm331_vm2, %v1479_v34, 0.0  ;;  %1277 = vmatpush.msrb.mxu0 %v1230_v25  ;;  %v1244_v34 = vld [vmem:[%s3217_s3 + $0xc0] sm:$0xf]  ;;  %vm2846_vm14 = vmand %vm562_vm5, %vm1464_vm8 }
 0x14e   : > { %v2794_v49 = vsel %vm331_vm2, %v1483_v30, 0.0  ;;  %v713_v61 = vadd.f32 %v1480_v50, %v2638_v6  ;;  %v645_v23 = vadd.f32 %v644_v11, %v2659_v17  ;;  %vm929_vm0 = vcmp.le.f32.partialorder %v2439_v47, 4.0  ;;  %1577 = vmatpush.msra.mxu2 %v1230_v25  ;;  %v1229_v6 = vld [vmem:[%s3217_s3 + $0x48] sm:$0xff]  ;;  %v1228_v17 = vld [vmem:[%s3217_s3 + $0x40] sm:$0xff] }
 0x14f   : > { %v2802_v27 = vadd.f32 %v1008_v12, %v1007_v10  ;;  %v1049_v13 = vmin.f32 %v1047_v33, %v1048_v20  ;;  %vm1144_vm1 = vcmp.eq.f32.partialorder %v3288_v26, %v2605_v31  ;;  %v1534_v46 = vsel %vm1140_vm7, 1.0, %v3274_v37  ;;  %1278 = vmatpush.msrb.mxu0 %v1229_v6  ;;  %v1227_v33 = vld [vmem:[%s3217_s3 + $0x38] sm:$0xff] }
 0x150   : > { %v634_v10 = vadd.f32 %v633_v4, %v632_v2  ;;  %v714_v32 = vadd.f32 %v2625_v39, %v713_v61  ;;  %vm693_vm10 = vcmp.eq.f32.partialorder %v2511_v24, %v2642_v54  ;;  %v2820_v59 = vadd.f32 %v927_v45, %v2439_v47  ;;  %1578 = vmatpush.msra.mxu2 %v1229_v6  ;;  %v1243_v12 = vld [vmem:[%s3217_s3 + $0xb8] sm:$0xff]  ;;  %v1241_v24 = vld [vmem:[%s3217_s3 + $0xa8] sm:$0xff] }
 0x151   : > { %v1050_v11 = vrot.slane %v1049_v13, 2  ;;  %v561_v30 = vadd.f32 %v560_v36, %v2640_v28  ;;  %v1477_v39 = vsel %vm689_vm3, 1.0, %v3274_v37  ;;  %v2832_v2 = vadd.f32 %v1083_v35, %v1082_v15  ;;  %1279 = vmatpush.msrb.mxu0 %v1228_v17  ;;  %v1225_v6 = vld [vmem:[%s3217_s3 + $0x28] sm:$0xff] }
 0x152   : > { %vm3289_vm11 = vcmask 1043456   ;;  %v715_v28 = vrot.slane %v714_v32, 4  ;;  %v646_v36 = vrot.slane %v645_v23, 1  ;;  %v1538_v15 = vsel %vm1144_vm1, 1.0, %v3274_v37  ;;  %1579 = vmatpush.msra.mxu2 %v1228_v17 }
 0x153   : > { %1560 = vmatpush.msk.msrb.mxu1 %vm3289_vm11, %v1244_v34  ;;  %vm3290_vm13 = vmmov %vm3289_vm11  ;;  %v1164_v41 = vadd.f32 %v2654_v16, %v1534_v46  ;;  %v1010_v4 = vrot.slane %v2802_v27, 2  ;;  %v1051_v56 = vmin.f32 %v1049_v13, %v1050_v11  ;;  %v1481_v45 = vsel %vm693_vm10, 1.0, %v3274_v37  ;;  %v1226_v16 = vld [vmem:[%s3217_s3 + $0x30] sm:$0xff]  ;;  %1280 = vmatpush.msrb.mxu0 %v1227_v33  ;;  %v3293_v13 = vld [vmem:[#allocation22_spill] sm:$0xff] }
 0x154   : > { %1588 = vmatpush.msk.msra.mxu3 %vm3290_vm13, %v1244_v34  ;;  %v721_v20 = vsel %vm331_vm2, %v1477_v39, 0.0  ;;  %v2868_v50 = vadd.f32 %v634_v10, %v2683_v53  ;;  %v716_v35 = vadd.f32 %v715_v28, %v714_v32  ;;  %vm1513_vm12 = vcmp.gt.f32.partialorder %v2820_v59, 4.0  ;;  %1580 = vmatpush.msra.mxu2 %v1227_v33  ;;  %v1223_v28 = vld [vmem:[%s3217_s3 + $0x18] sm:$0xff]  ;;  %v3307_v34 = vld [vmem:[#allocation23_spill] sm:$0xff] }
 0x155   : > { %1321 = vmatpush.msrb.mxu1 %v1243_v12  ;;  %v723_v25 = vadd.f32 %v722_v57, %v721_v20  ;;  %v1052_v61 = vrot.slane %v1051_v56, 1  ;;  %v2882_v26 = vsel %vm2846_vm14, %v3293_v13, %v484_v3  ;;  %v724_v57 = vsel %vm331_vm2, %v1481_v45, 0.0  ;;  %1281 = vmatpush.msrb.mxu0 %v1226_v16  ;;  %v1240_v3 = vld [vmem:[%s3217_s3 + $0xa0] sm:$0xff]  ;;  %vm2907_vm9 = vmand %vm929_vm0, %vm1513_vm12 }
 0x156   : > { %1589 = vmatpush.msra.mxu3 %v1243_v12  ;;  %v1165_v46 = vadd.f32 %v1538_v15, %v1164_v41  ;;  %v717_v17 = vrot.slane %v716_v35, 2  ;;  %v2889_v51 = vadd.f32 %v561_v30, %v2664_v60  ;;  %v1085_v40 = vrot.slane %v2832_v2, 1  ;;  %1581 = vmatpush.msra.mxu2 %v1226_v16 }
 0x157   : > { %1322 = vmatpush.msrb.mxu1 %v1242_v21  ;;  %v725_v10 = vadd.f32 %v724_v57, %v723_v25  ;;  %v2892_v55 = vmin.f32 %v1051_v56, %v1052_v61  ;;  %v2897_v32 = vadd.f32 %v646_v36, %v645_v23  ;;  %v1540_v11 = vsel %vm1146_vm4, 1.0, %v3274_v37  ;;  %v1224_v23 = vld [vmem:[%s3217_s3 + $0x20] sm:$0xff]  ;;  %1282 = vmatpush.msrb.mxu0 %v1225_v6  ;;  %v1237_v61 = vld [vmem:[%s3217_s3 + $0x88] sm:$0xff] }
 0x158   : > { %1590 = vmatpush.msra.mxu3 %v1242_v21  ;;  %v2912_v30 = vadd.f32 %v1010_v4, %v2802_v27  ;;  %vm1474_vm15 = vcmp.gt.f32.partialorder %v2868_v50, 4.0  ;;  %v718_v14 = vadd.f32 %v717_v17, %v716_v35  ;;  %v2918_v39 = vadd.f32 %v1540_v11, %v1165_v46  ;;  %v1239_v27 = vld [vmem:[%s3217_s3 + $0x98] sm:$0xff]  ;;  %1582 = vmatpush.msra.mxu2 %v1225_v6  ;;  %v1238_v21 = vld [vmem:[%s3217_s3 + $0x90] sm:$0xff]  ;;  %v1221_v57 = vld [vmem:[%s3217_s3 + $0x8] sm:$0xff] }
 0x159   : > { %1323 = vmatpush.msrb.mxu1 %v1241_v24  ;;  %v937_v47 = vsel %vm2907_vm9, %v2471_v58, %v2447_v22  ;;  %vm1055_vm5 = vcmp.eq.f32.partialorder %v2721_v62, %v2892_v55  ;;  %vm1057_vm6 = vcmp.eq.f32.partialorder %v2727_v44, %v2892_v55  ;;  %vm1059_vm3 = vcmp.eq.f32.partialorder %v2733_v38, %v2892_v55  ;;  %v1222_v35 = vld [vmem:[%s3217_s3 + $0x10] sm:$0xff] }
 0x15a   : > { %1591 = vmatpush.msra.mxu3 %v1241_v24  ;;  %vm1061_vm4 = vcmp.eq.f32.partialorder %v2742_v9, %v2892_v55  ;;  %vm648_vm7 = vcmp.le.f32.partialorder %v2683_v53, 4.0  ;;  %v1525_v33 = vsel %vm1055_vm5, 1.0, %v3274_v37  ;;  %v1527_v12 = vsel %vm1057_vm6, 1.0, %v3274_v37  ;;  %1283 = vmatpush.msrb.mxu0 %v1224_v23 }
 0x15b   : > { %v1529_v63 = vsel %vm1059_vm3, 1.0, %v3274_v37  ;;  %1324 = vmatpush.msrb.mxu1 %v1240_v3  ;;  %v727_v36 = vadd.f32 %v2794_v49, %v725_v10  ;;  %v1531_v15 = vsel %vm1061_vm4, 1.0, %v3274_v37  ;;  %v1087_v41 = vsel %vm331_vm2, %v1525_v33, 0.0  ;;  %1583 = vmatpush.msra.mxu2 %v1224_v23  ;;  %v1236_v10 = vld [vmem:[%s3217_s3 + $0x80] sm:$0xff]  ;;  %vm3027_vm12 = vmand %vm648_vm7, %vm1474_vm15 }
 0x15c   : > { %v1088_v4 = vsel %vm331_vm2, %v1527_v12, 0.0  ;;  %v1090_v56 = vsel %vm331_vm2, %v1529_v63, 0.0  ;;  %1592 = vmatpush.msra.mxu3 %v1240_v3  ;;  %vm1455_vm8 = vcmp.gt.f32.partialorder %v2664_v60, 4.0  ;;  %v2967_v45 = vsel %vm1055_vm5, inf, %v2721_v62  ;;  %1284 = vmatpush.msrb.mxu0 %v1223_v28 }
 0x15d   : > { %v1089_v49 = vadd.f32 %v1088_v4, %v1087_v41  ;;  %v2973_v20 = vsel %vm1057_vm6, inf, %v2727_v44  ;;  %v2979_v16 = vsel %vm1059_vm3, inf, %v2733_v38  ;;  %1325 = vmatpush.msrb.mxu1 %v1239_v27  ;;  %v2988_v62 = vsel %vm1061_vm4, inf, %v2742_v9  ;;  %1584 = vmatpush.msra.mxu2 %v1223_v28 }
 0x15e   : > { %v1127_v44 = vsel %vm331_vm2, %v2967_v45, inf  ;;  %v1128_v25 = vsel %vm331_vm2, %v2973_v20, inf  ;;  %v1129_v38 = vsel %vm331_vm2, %v2979_v16, inf  ;;  %1593 = vmatpush.msra.mxu3 %v1239_v27  ;;  %vm477_vm0 = vcmp.le.f32.partialorder %v2418_v8, 4.0  ;;  %1285 = vmatpush.msrb.mxu0 %v1222_v35  ;;  %v1220_v27 = vld [vmem:[%s3217_s3] sm:$0xff] }
 0x15f   : > { %vm1512_vm1 = vcmp.gt.f32.partialorder %v2676_v7, 4.0  ;;  %v1091_v9 = vadd.f32 %v1090_v56, %v1089_v49  ;;  %v1130_v24 = vmin.f32 %v1127_v44, %v1129_v38  ;;  %v1131_v13 = vsel %vm331_vm2, %v2988_v62, inf  ;;  %1326 = vmatpush.msrb.mxu1 %v1238_v21  ;;  %1585 = vmatpush.msra.mxu2 %v1222_v35  ;;  %vm3051_vm3 = vmand %vm477_vm0, %vm1455_vm8 }
 0x160   : > { %v719_v46 = vrot.slane %v718_v14, 1  ;;  %vm1465_vm10 = vcmp.gt.f32.partialorder %v2889_v51, 4.0  ;;  %v1092_v6 = vsel %vm331_vm2, %v1531_v15, 0.0  ;;  %v1132_v17 = vmin.f32 %v1128_v25, %v1131_v13  ;;  %1594 = vmatpush.msra.mxu3 %v1238_v21  ;;  %1286 = vmatpush.msrb.mxu0 %v1221_v57 }
 0x161   : > { %vm1445_vm11 = vcmp.gt.f32.partialorder %v2418_v8, 4.0  ;;  %v728_v3 = vrot.slane %v727_v36, 4  ;;  %vm928_vm13 = vcmp.le.f32.partialorder %v2171_v29, 4.0  ;;  %vm1522_vm14 = vcmp.gt.f32.partialorder %v2759_v18, 4.0  ;;  %1327 = vmatpush.msrb.mxu1 %v1237_v61  ;;  %1586 = vmatpush.msra.mxu2 %v1221_v57 }
 0x162   : > { %v1167_v11 = vrot.slane %v2918_v39, 4  ;;  %v1093_v23 = vadd.f32 %v1092_v6, %v1091_v9  ;;  %v720_v33 = vadd.f32 %v719_v46, %v718_v14  ;;  %v1086_v12 = vadd.f32 %v1085_v40, %v2832_v2  ;;  %1595 = vmatpush.msra.mxu3 %v1237_v61  ;;  %1287 = vmatpush.msrb.mxu0 %v1220_v27  ;;  %v3304_v6 = vld [vmem:[#allocation15_spill] sm:$0xff] }
 0x163   : > { %v1012_v63 = vrot.slane %v2912_v30, 1  ;;  %v1133_v28 = vmin.f32 %v1130_v24, %v1132_v17  ;;  %v729_v15 = vadd.f32 %v728_v3, %v727_v36  ;;  %1328 = vmatpush.msrb.mxu1 %v1236_v10  ;;  %v651_v40 = vadd.f32 %v2897_v32, %v2889_v51  ;;  %1587 = vmatpush.msra.mxu2 %v1220_v27  ;;  %v3310_v3 = vld [vmem:[#allocation17_spill] sm:$0xff]  ;;  %v3316_v14 = vld [vmem:[#allocation7_spill] sm:$0xff] }
 0x164   : > { %v1168_v41 = vadd.f32 %v1167_v11, %v2918_v39  ;;  %v1094_v4 = vrot.slane %v1093_v23, 4  ;;  %v736_v2 = vadd.f32 %v720_v33, %v2868_v50  ;;  %vm734_vm5 = vcmp.le.f32.partialorder %v2868_v50, 4.0  ;;  %1596 = vmatpush.msra.mxu3 %v1236_v10 }
 0x165   : > { %v1013_v36 = vadd.f32 %v1012_v63, %v2912_v30  ;;  %v1134_v56 = vrot.slane %v1133_v28, 4  ;;  %v730_v39 = vrot.slane %v729_v15, 2  ;;  %v1102_v53 = vadd.f32 %v1086_v12, %v2759_v18  ;;  %v3313_v63 = vld [vmem:[#allocation9_spill] sm:$0xff] }
 0x166   : > { %v1169_v21 = vrot.slane %v1168_v41, 2  ;;  %vm1484_vm15 = vcmp.gt.f32.partialorder %v736_v2, 4.0  ;;  %v1095_v35 = vadd.f32 %v1094_v4, %v1093_v23  ;;  %v656_v32 = vsel %vm3027_vm12, %v2161_v42, %v2882_v26  ;;  %v3300_v26 = vld [vmem:[#allocation3_spill] sm:$0xff] }
 0x167   : > { %v3038_v49 = vadd.f32 %v1013_v36, %v2820_v59  ;;  %v1135_v44 = vmin.f32 %v1133_v28, %v1134_v56  ;;  %vm740_vm6 = vmand %vm734_vm5, %vm1484_vm15  ;;  %v731_v30 = vadd.f32 %v730_v39, %v729_v15  ;;  %vm1015_vm4 = vcmp.le.f32.partialorder %v2820_v59, 4.0  ;;  %v3314_v15 = vld [vmem:[#allocation4_spill] sm:$0xff]  ;;  %v3320_v56 = vld [vmem:[#allocation13_spill] sm:$0xff] }
 0x168   : > { %v1170_v50 = vadd.f32 %v1169_v21, %v1168_v41  ;;  %v3045_v25 = vsel %vm740_vm6, %v2473_v1, %v656_v32  ;;  %v1096_v61 = vrot.slane %v1095_v35, 2  ;;  %v3301_v1 = vld [vmem:[#allocation11_spill] sm:$0xff]  ;;  %v1621_v24 = vmov 1.0   ;;  %vm3068_vm6 = vmand %vm928_vm13, %vm1512_vm1  ;;  %v3321_v21 = vld [vmem:[#allocation6_spill] sm:$0xff] }
 0x169   : > { %vm1523_vm7 = vcmp.gt.f32.partialorder %v3038_v49, 4.0  ;;  %v1136_v42 = vrot.slane %v1135_v44, 2  ;;  %vm744_vm12 = vcmp.lt.f32.partialorder %v3300_v26, %v3045_v25  ;;  %vm750_vm5 = vcmp.lt.f32.partialorder %v3301_v1, %v3045_v25  ;;  %v3322_v32 = vld [vmem:[#allocation10_spill] sm:$0xff]  ;;  %v3324_v59 = vld [vmem:[#allocation12_spill] sm:$0xff] }
 0x16a   : > { %v732_v9 = vrot.slane %v731_v30, 1  ;;  %vm1021_vm15 = vmand %vm1015_vm4, %vm1523_vm7  ;;  %1552 = vmatmul.msk.f32.vlgmr.msrb.gmra.mxu0 %vm744_vm12, %v1621_v24  ;;  %1555 = vmatmul.msk.f32.vlgmr.msra.gmra.mxu2 %vm750_vm5, %v1621_v24  ;;  %vm563_vm8 = vcmp.le.f32.partialorder %v2664_v60, 4.0  ;;  %vm1475_vm0 = vcmp.gt.f32.partialorder %v651_v40, 4.0  ;;  %v1171_v13 = vrot.slane %v1170_v50, 1 }
 0x16b   : > { %v3078_v57 = vsel %vm1021_vm15, %v2669_v19, %v937_v47  ;;  %v1137_v46 = vmin.f32 %v1135_v44, %v1136_v42  ;;  %vm569_vm4 = vmand %vm563_vm8, %vm1465_vm10  ;;  %vm1014_vm7 = vcmp.le.f32.partialorder %v2676_v7, 4.0  ;;  %v1097_v29 = vadd.f32 %v1096_v61, %v1095_v35  ;;  %v3323_v42 = vld [vmem:[#allocation8_spill] sm:$0xff] }
 0x16c   : > { %v733_v60 = vadd.f32 %v732_v9, %v731_v30  ;;  %v399_v17 = vsel %vm1445_vm11, %v3304_v6, inf  ;;  %vm649_vm1 = vcmp.le.f32.partialorder %v2889_v51, 4.0  ;;  %vm3089_vm9 = vmand %vm1014_vm7, %vm1522_vm14  ;;  %vm1532_vm13 = vcmp.gt.f32.partialorder %v1102_v53, 4.0  ;;  %v3327_v6 = vld [vmem:[#allocation18_spill] sm:$0xff] }
 0x16d   : > { %v1172_v58 = vadd.f32 %v1171_v13, %v1170_v50  ;;  %v1138_v19 = vrot.slane %v1137_v46, 1  ;;  %v485_v7 = vsel %vm3051_vm3, %v3307_v34, %v399_v17  ;;  %vm3097_vm10 = vmand %vm649_vm1, %vm1475_vm0  ;;  %v1098_v51 = vrot.slane %v1097_v29, 1 }
 0x16e   : > { %v737_v8 = vadd.f32 %v733_v60, %v651_v40  ;;  %v571_v10 = vsel %vm569_vm4, %v2319_v5, %v485_v7  ;;  %v936_v11 = vsel %vm3068_vm6, %v3310_v3, %v2667_v0  ;;  %vm1100_vm11 = vcmp.le.f32.partialorder %v2759_v18, 4.0  ;;  %v3326_v60 = vld [vmem:[#allocation21_spill] sm:$0xff] }
 0x16f   : > { %v1188_v23 = vadd.f32 %v1172_v58, %v1102_v53  ;;  %v3107_v27 = vmin.f32 %v1137_v46, %v1138_v19  ;;  %vm735_vm14 = vcmp.le.f32.partialorder %v651_v40, 4.0  ;;  %vm3109_vm12 = vmand %vm1100_vm11, %vm1532_vm13  ;;  %v1099_v12 = vadd.f32 %v1098_v51, %v1097_v29 }
 0x170   : > { %vm1485_vm3 = vcmp.gt.f32.partialorder %v737_v8, 4.0  ;;  %v657_v5 = vsel %vm3097_vm10, %v2469_v52, %v571_v10  ;;  %v1022_v0 = vsel %vm3089_vm9, %v2052_v43, %v936_v11  ;;  %vm1186_vm15 = vcmp.le.f32.partialorder %v1102_v53, 4.0  ;;  %v3315_v52 = vld [vmem:[#allocation2_spill] sm:$0xff] }
 0x171   : > { %vm741_vm5 = vmand %vm735_vm14, %vm1485_vm3  ;;  %vm1542_vm8 = vcmp.gt.f32.partialorder %v1188_v23, 4.0  ;;  %vm1143_vm0 = vcmp.eq.f32.partialorder %v2973_v20, %v3107_v27  ;;  %vm746_vm6 = vcmp.lt.f32.partialorder %v3313_v63, %v3045_v25  ;;  %v1103_v28 = vadd.f32 %v1099_v12, %v3038_v49 }
 0x172   : > { %v743_v18 = vsel %vm741_vm5, %v2642_v54, %v657_v5  ;;  %vm1192_vm4 = vmand %vm1186_vm15, %vm1542_vm8  ;;  %1553 = vmatmul.msk.f32.gmra.mxu0 %vm746_vm6, %v1621_v24  ;;  %v1108_v43 = vsel %vm3109_vm12, %v2264_v48, %v1022_v0  ;;  %v1537_v20 = vsel %vm1143_vm0, 1.0, %v3274_v37  ;;  %vm1101_vm13 = vcmp.le.f32.partialorder %v3038_v49, 4.0 }
 0x173   : > { %vm745_vm7 = vcmp.lt.f32.partialorder %v3314_v15, %v743_v18  ;;  %vm749_vm1 = vcmp.lt.f32.partialorder %v3315_v52, %v743_v18  ;;  %v1194_v4 = vsel %vm1192_vm4, %v2605_v31, %v1108_v43  ;;  %vm1147_vm10 = vcmp.eq.f32.partialorder %v2988_v62, %v3107_v27 }
 0x174   : > { %v1487_v54 = vsel %vm745_vm7, 1.0, %v3274_v37  ;;  %v1491_v41 = vsel %vm749_vm1, 1.0, %v3274_v37  ;;  %vm1196_vm9 = vcmp.lt.f32.partialorder %v3316_v14, %v1194_v4  ;;  %vm1533_vm11 = vcmp.gt.f32.partialorder %v1103_v28, 4.0 }
 0x175   : > { %1561 = vmatmul.msk.f32.vlgmr.msrb.gmra.mxu1 %vm331_vm2, %v1487_v54  ;;  %1563 = vmatmul.msk.f32.vlgmr.msra.gmra.mxu3 %vm331_vm2, %v1491_v41  ;;  %vm1141_vm14 = vcmp.eq.f32.partialorder %v2967_v45, %v3107_v27  ;;  %vm1145_vm3 = vcmp.eq.f32.partialorder %v2979_v16, %v3107_v27  ;;  %vm3146_vm12 = vmand %vm1101_vm13, %vm1533_vm11  ;;  %v1174_v40 = vsel %vm331_vm2, %v1537_v20, 0.0  ;;  %v1541_v36 = vsel %vm1147_vm10, 1.0, %v3274_v37  ;;  %v3319_v16 = vld [vmem:[#allocation5_spill] sm:$0xff] }
 0x176   : > { %1556 = vmatmul.msk.f32.gmra.mxu2 %vm1196_vm9, %v1621_v24  ;;  %v1535_v31 = vsel %vm1141_vm14, 1.0, %v3274_v37  ;;  %v1539_v2 = vsel %vm1145_vm3, 1.0, %v3274_v37  ;;  %v1109_v62 = vsel %vm3146_vm12, %v2892_v55, %v3078_v57  ;;  %vm747_vm5 = vcmp.lt.f32.partialorder %v3319_v16, %v743_v18  ;;  %v3325_v57 = vld [vmem:[#allocation20_spill] sm:$0xff] }
 0x177   : > { %v1173_v45 = vsel %vm331_vm2, %v1535_v31, 0.0  ;;  %vm751_vm15 = vcmp.lt.f32.partialorder %v3320_v56, %v743_v18  ;;  %vm748_vm8 = vcmp.lt.f32.partialorder %v3321_v21, %v3045_v25  ;;  %v1176_v53 = vsel %vm331_vm2, %v1539_v2, 0.0 }
 0x178   : > { %v1175_v39 = vadd.f32 %v1174_v40, %v1173_v45  ;;  %v1489_v35 = vsel %vm747_vm5, 1.0, %v3274_v37  ;;  %v1493_v55 = vsel %vm751_vm15, 1.0, %v3274_v37  ;;  %v1178_v44 = vsel %vm331_vm2, %v1541_v36, 0.0 }
 0x179   : > { %vm1198_vm0 = vcmp.lt.f32.partialorder %v3322_v32, %v1194_v4  ;;  %vm1200_vm6 = vcmp.lt.f32.partialorder %v3323_v42, %v1194_v4  ;;  %vm1187_vm4 = vcmp.le.f32.partialorder %v1103_v28, 4.0  ;;  %vm1202_vm1 = vcmp.lt.f32.partialorder %v3324_v59, %v1194_v4 }
 0x17a   : > { %1554 = vmatmul.msk.f32.gmra.mxu0 %vm748_vm8, %v1621_v24  ;;  %v1177_v49 = vadd.f32 %v1176_v53, %v1175_v39  ;;  %vm1354_vm3 = vcmask 400384  }
 0x17c   : > { %v1179_v30 = vadd.f32 %v1178_v44, %v1177_v49 }
 0x17d   : > { %1562 = vmatmul.msk.f32.gmra.mxu1 %vm331_vm2, %v1489_v35  ;;  %1564 = vmatmul.msk.f32.gmra.mxu3 %vm331_vm2, %v1493_v55 }
 0x17e   : > { %1557 = vmatmul.msk.f32.gmra.mxu2 %vm1198_vm0, %v1621_v24  ;;  %v1180_v50 = vrot.slane %v1179_v30, 4 }
 0x180   : > { %v1181_v25 = vadd.f32 %v1180_v50, %v1179_v30 }
 0x182   : > { %v1182_v38 = vrot.slane %v1181_v25, 2 }
 0x184   : > { %v1183_v61 = vadd.f32 %v1182_v38, %v1181_v25 }
 0x186   : > { %1558 = vmatmul.msk.f32.gmra.mxu2 %vm1200_vm6, %v1621_v24  ;;  %v1184_v26 = vrot.slane %v1183_v61, 1 }
 0x188   : > { %v1185_v1 = vadd.f32 %v1184_v26, %v1183_v61 }
 0x18a   : > { %v1189_v9 = vadd.f32 %v1185_v1, %v1103_v28 }
 0x18c   : > { %vm1543_vm7 = vcmp.gt.f32.partialorder %v1189_v9, 4.0 }
 0x18d   : > { %vm1193_vm9 = vmand %vm1187_vm4, %vm1543_vm7 }
 0x18e   : > { %1559 = vmatmul.msk.f32.gmra.mxu2 %vm1202_vm1, %v1621_v24  ;;  %v1195_v13 = vsel %vm1193_vm9, %v3107_v27, %v1109_v62  ;;  %v3328_v24 = vld [vmem:[#allocation19_spill] sm:$0xff] }
 0x18f   : > { %vm1197_vm13 = vcmp.lt.f32.partialorder %v3325_v57, %v1195_v13  ;;  %vm1199_vm10 = vcmp.lt.f32.partialorder %v3326_v60, %v1195_v13  ;;  %vm1201_vm11 = vcmp.lt.f32.partialorder %v3327_v6, %v1195_v13  ;;  %vm1203_vm14 = vcmp.lt.f32.partialorder %v3328_v24, %v1195_v13 }
 0x190   : > { %v1545_v46 = vsel %vm1197_vm13, 1.0, %v3274_v37  ;;  %v1547_v29 = vsel %vm1199_vm10, 1.0, %v3274_v37  ;;  %v1549_v17 = vsel %vm1201_vm11, 1.0, %v3274_v37  ;;  %v1551_v22 = vsel %vm1203_vm14, 1.0, %v3274_v37 }
 0x191   : > { %1565 = vmatmul.msk.f32.gmra.mxu3 %vm331_vm2, %v1545_v46 }
 0x199   : > { %1566 = vmatmul.msk.f32.gmra.mxu3 %vm331_vm2, %v1547_v29 }
 0x1a1   : > { %1567 = vmatmul.msk.f32.gmra.mxu3 %vm331_vm2, %v1549_v17 }
 0x1a9   : > { %1568 = vmatmul.msk.f32.gmra.mxu3 %vm331_vm2, %v1551_v22 }
 0x1e7   : > { %v1289_v58 = vpop.f32.mrf.mxu0 }
 0x1ed   : > { %v1298_v3 = vpop.f32.mrf.mxu2 }
 0x1ef   : > { %v1292_v19 = vpop.f32.mrf.mxu0 }
 0x1f2   : > { %v1330_v34 = vpop.f32.mrf.mxu1 }
 0x1f3   : > { %v1331_v7 = vadd.f32 %v1330_v34, %v1289_v58 }
 0x1f5   : > { %1355 = vst.msk [vmem:[%s3193_s18] sm:$0xff] %vm1354_vm3, %v1331_v7 }
 0x1f7   : > { %v1295_v47 = vpop.f32.mrf.mxu0 }
 0x1f8   : > { %v1336_v37 = vpop.f32.mrf.mxu3 }
 0x1f9   : > { %v1337_v8 = vadd.f32 %v1336_v37, %v1295_v47  ;;  %v1301_v27 = vpop.f32.mrf.mxu2 }
 0x1fa   : > { %v1333_v51 = vpop.f32.mrf.mxu1 }
 0x1fb   : > { %v1334_v10 = vadd.f32 %v1333_v51, %v1292_v19  ;;  %1357 = vst.msk [vmem:[%s3193_s18 + $0x10] sm:$0xff] %vm1354_vm3, %v1337_v8 }
 0x1fd   : > { %1356 = vst.msk [vmem:[%s3193_s18 + $0x8] sm:$0xff] %vm1354_vm3, %v1334_v10 }
 0x200   : > { %v1339_v11 = vpop.f32.mrf.mxu3 }
 0x201   : > { %v1340_v23 = vadd.f32 %v1339_v11, %v1298_v3  ;;  %v1304_v5 = vpop.f32.mrf.mxu2 }
 0x203   : > { %1358 = vst.msk [vmem:[%s3193_s18 + $0x18] sm:$0xff] %vm1354_vm3, %v1340_v23 }
 0x209   : > { %v1307_v63 = vpop.f32.mrf.mxu2 }
 0x211   : > { %v1310_v52 = vpop.f32.mrf.mxu2 }
 0x214   : > { %v1342_v33 = vpop.f32.mrf.mxu3 }
 0x215   : > { %v1343_v12 = vadd.f32 %v1342_v33, %v1301_v27 }
 0x217   : > { %1359 = vst.msk [vmem:[%s3193_s18 + $0x20] sm:$0xff] %vm1354_vm3, %v1343_v12 }
 0x21c   : > { %v1345_v0 = vpop.f32.mrf.mxu3 }
 0x21d   : > { %v1346_v18 = vadd.f32 %v1345_v0, %v1304_v5 }
 0x21f   : > { %1360 = vst.msk [vmem:[%s3193_s18 + $0x28] sm:$0xff] %vm1354_vm3, %v1346_v18 }
 0x224   : > { %v1348_v28 = vpop.f32.mrf.mxu3 }
 0x225   : > { %v1349_v15 = vadd.f32 %v1348_v28, %v1307_v63 }
 0x227   : > { %1361 = vst.msk [vmem:[%s3193_s18 + $0x30] sm:$0xff] %vm1354_vm3, %v1349_v15 }
 0x22c   : > { %v1351_v43 = vpop.f32.mrf.mxu3 }
 0x22d   : > { %v1352_v20 = vadd.f32 %v1351_v43, %v1310_v52 }
 0x22f   : > { %1362 = vst.msk [vmem:[%s3193_s18 + $0x38] sm:$0xff] %vm1354_vm3, %v1352_v20 }
 0x230 PF: > { %s14_s15 = sadd.s32 1, %s1617_s15  }
 0x231   : > { %p11_p4 = scmp.ge.s32.totalorder %s14_s15, 4  }
 0x233   :  { %13 = sbr.rel (!%p11_p4) target bundleno = 1 (0x1), region = 66 }

</bundles_post_ra>
